<compile_context>
chip_gen: v7x
topology: tpu7x:2x2x1
jax: 0.10.0
libtpu: 0.0.40
codegen_flags: <defaults>
</compile_context>

<pallas_src>
import math

import jax
import jax.numpy as jnp
from jax.experimental import pallas as pl
from jax.experimental.pallas import tpu as pltpu

# ---- model hyper-parameters (small, consistent with the module) -------------
D_MODEL = 32          # d_model
NHEAD = 4             # nhead
HEAD_DIM = D_MODEL // NHEAD
HIDDEN = 512          # linear1 output (hard-coded 512 in the module)
LAST_DIM = 64         # last_dim (configurable in the module; small here)
LN_EPS = 1e-5         # torch.nn.LayerNorm default eps

T_LEN = 8             # tgt sequence length
S_LEN = 16            # memory sequence length
BATCH = 2


# ---- shared math helpers -----------------------------------------------------
def _layernorm(x, g, b):
    mu = jnp.mean(x, axis=-1, keepdims=True)
    var = jnp.mean((x - mu) ** 2, axis=-1, keepdims=True)
    return (x - mu) * jax.lax.rsqrt(var + LN_EPS) * g + b


def _mha_fused(q2, k2, v2, wo, bo, b, tq, tk):
    """Multi-head attention given already-projected rows.

    q2: (b*tq, D) (scale already folded in), k2/v2: (b*tk, D).
    Per-head scores/softmax/context stay tiny batched einsums (review #3 fusion
    left out — optional); heads are re-packed on lanes for ONE output matmul.
    Returns (b*tq, D).
    """
    ctxs = []
    for h in range(NHEAD):
        sl = slice(h * HEAD_DIM, (h + 1) * HEAD_DIM)
        qh = q2[:, sl].reshape(b, tq, HEAD_DIM)
        kh = k2[:, sl].reshape(b, tk, HEAD_DIM)
        vh = v2[:, sl].reshape(b, tk, HEAD_DIM)
        s = jnp.einsum("bqd,bkd->bqk", qh, kh,
                       preferred_element_type=jnp.float32)
        s = s - jnp.max(s, axis=-1, keepdims=True)
        p = jnp.exp(s)
        # one divide per row, then cheap multiplies (review #8)
        p = p * (1.0 / jnp.sum(p, axis=-1, keepdims=True))
        ctx = jnp.einsum("bqk,bkd->bqd", p, vh,
                         preferred_element_type=jnp.float32)
        ctxs.append(ctx.reshape(b * tq, HEAD_DIM))
    ctx = jnp.concatenate(ctxs, axis=-1)           # heads packed on lanes (b*tq, D)
    # single fused output projection against un-split wo (review #2)
    return jnp.dot(ctx, wo, preferred_element_type=jnp.float32) + bo


def _decoder_core(x3, mem3,
                  w_qkv_s, b_qkv_s, wo_s, bo_s,
                  w_q_c, b_q_c, w_kv_c, b_kv_c, wo_c, bo_c,
                  g1, b1n, g2, b2n, w1, b1, w2, b2):
    """x3: (Bb, T, D), mem3: (Bb, S, D) -> (Bb, T, LAST_DIM). All f32."""
    bb, t, d = x3.shape
    s = mem3.shape[1]

    x = x3.reshape(bb * t, d)        # flatten batch into rows (tile-aligned)
    m = mem3.reshape(bb * s, d)

    # ---- self-attention: one fused (D, 3D) QKV matmul (review #1) ----
    qkv = jnp.dot(x, w_qkv_s, preferred_element_type=jnp.float32) + b_qkv_s
    a1 = _mha_fused(qkv[:, :d], qkv[:, d:2 * d], qkv[:, 2 * d:],
                    wo_s, bo_s, bb, t, t)
    x = _layernorm(x + a1, g1, b1n)                  # dropout1 == identity

    # ---- cross-attention: Q matmul + fused (D, 2D) KV matmul ----
    q = jnp.dot(x, w_q_c, preferred_element_type=jnp.float32) + b_q_c
    kv = jnp.dot(m, w_kv_c, preferred_element_type=jnp.float32) + b_kv_c
    a2 = _mha_fused(q, kv[:, :d], kv[:, d:], wo_c, bo_c, bb, t, s)
    x = _layernorm(x + a2, g2, b2n)                  # dropout2 == identity

    # ---- FFN: linear2(relu(linear1(x))); NO residual / norm3 (matches forward)
    h = jnp.maximum(
        jnp.dot(x, w1, preferred_element_type=jnp.float32) + b1, 0.0)
    y = jnp.dot(h, w2, preferred_element_type=jnp.float32) + b2
    return y.reshape(bb, t, LAST_DIM)


# ---- Pallas kernel (works for both the grid-less and per-batch-grid paths) ---
def decoder_layer_kernel(tgt_ref, mem_ref, *refs):
    out_ref = refs[-1]
    params = [r[...] for r in refs[:-1]]
    x3 = tgt_ref[...].astype(jnp.float32)     # (Bb, T, D)   Bb = B or 1
    mem3 = mem_ref[...].astype(jnp.float32)   # (Bb, S, D)
    y = _decoder_core(x3, mem3, *params)      # (Bb, T, LAST_DIM)
    out_ref[...] = y.astype(out_ref.dtype)


KPARAM_ORDER = [
    "w_qkv_s", "b_qkv_s", "wo_s", "bo_s",
    "w_q_c", "b_q_c", "w_kv_c", "b_kv_c", "wo_c", "bo_c",
    "g1", "b1n", "g2", "b2n",
    "w1", "b1", "w2", "b2",
]


def prepare_params(p):
    """One-time host-side prep: fuse QKV / KV weight matrices and fold the
    1/sqrt(head_dim) scale into the Q columns (exact)."""
    scale = 1.0 / math.sqrt(HEAD_DIM)
    return {
        # self-attention: fully fused QKV (review #1)
        "w_qkv_s": jnp.concatenate([p["wq_s"] * scale, p["wk_s"], p["wv_s"]], axis=1),
        "b_qkv_s": jnp.concatenate([p["bq_s"] * scale, p["bk_s"], p["bv_s"]], axis=1),
        "wo_s": p["wo_s"], "bo_s": p["bo_s"],
        # cross-attention: Q separate (different source), K|V fused
        "w_q_c": p["wq_c"] * scale, "b_q_c": p["bq_c"] * scale,
        "w_kv_c": jnp.concatenate([p["wk_c"], p["wv_c"]], axis=1),
        "b_kv_c": jnp.concatenate([p["bk_c"], p["bv_c"]], axis=1),
        "wo_c": p["wo_c"], "bo_c": p["bo_c"],
        "g1": p["g1"], "b1n": p["b1n"], "g2": p["g2"], "b2n": p["b2n"],
        "w1": p["w1"], "b1": p["b1"],
        # no lane padding of w2/b2 (review #6): masked store on 8 rows is
        # negligible and it halves the w2 DMA + removes the wrapper slice.
        "w2": p["w2"], "b2": p["b2"],
    }


def _use_batch_grid() -> bool:
    """Only multi-TensorCore chips (v7x) benefit from a per-batch grid."""
    try:
        kind = jax.devices()[0].device_kind.lower()
    except Exception:
        return False
    return ("v7" in kind) or ("7x" in kind)


def ptransformer_decoder_layer(tgt, memory, kparams):
    """tgt: (T, B, D), memory: (S, B, D) -> (T, B, LAST_DIM)."""
    T, B, D = tgt.shape
    S = memory.shape[0]
    weights = [kparams[k] for k in KPARAM_ORDER]

    tgt_b = jnp.transpose(tgt, (1, 0, 2))      # (B, T, D)
    mem_b = jnp.transpose(memory, (1, 0, 2))   # (B, S, D)

    if _use_batch_grid():
        # v7x: one batch element per TensorCore (review #4 / #10).
        def wspec(a):
            nd = a.ndim
            return pl.BlockSpec(a.shape, lambda b, _nd=nd: (0,) * _nd)

        out = pl.pallas_call(
            decoder_layer_kernel,
            out_shape=jax.ShapeDtypeStruct((B, T, LAST_DIM), jnp.float32),
            grid_spec=pltpu.PrefetchScalarGridSpec(
                num_scalar_prefetch=0,
                grid=(B,),
                in_specs=[pl.BlockSpec((1, T, D), lambda b: (b, 0, 0)),
                          pl.BlockSpec((1, S, D), lambda b: (b, 0, 0))]
                         + [wspec(a) for a in weights],
                out_specs=pl.BlockSpec((1, T, LAST_DIM), lambda b: (b, 0, 0)),
            ),
            compiler_params=pltpu.CompilerParams(
                dimension_semantics=("parallel",)),
        )(tgt_b, mem_b, *weights)
    else:
        # v5e/v6e (single TensorCore): grid-less call, whole batch in one
        # kernel invocation — no per-step overhead (review #4).
        out = pl.pallas_call(
            decoder_layer_kernel,
            out_shape=jax.ShapeDtypeStruct((B, T, LAST_DIM), jnp.float32),
        )(tgt_b, mem_b, *weights)

    return jnp.transpose(out, (1, 0, 2))       # back to (T, B, LAST_DIM)


# ---- deterministic parameter init (synthetic weights, no checkpoint) ---------
def init_params(key):
    names_shapes = [
        ("wq_s", (D_MODEL, D_MODEL)), ("wk_s", (D_MODEL, D_MODEL)),
        ("wv_s", (D_MODEL, D_MODEL)), ("bq_s", (1, D_MODEL)),
        ("bk_s", (1, D_MODEL)), ("bv_s", (1, D_MODEL)),
        ("wo_s", (D_MODEL, D_MODEL)), ("bo_s", (1, D_MODEL)),
        ("wq_c", (D_MODEL, D_MODEL)), ("wk_c", (D_MODEL, D_MODEL)),
        ("wv_c", (D_MODEL, D_MODEL)), ("bq_c", (1, D_MODEL)),
        ("bk_c", (1, D_MODEL)), ("bv_c", (1, D_MODEL)),
        ("wo_c", (D_MODEL, D_MODEL)), ("bo_c", (1, D_MODEL)),
        ("w1", (D_MODEL, HIDDEN)), ("b1", (1, HIDDEN)),
        ("w2", (HIDDEN, LAST_DIM)), ("b2", (1, LAST_DIM)),
    ]
    keys = jax.random.split(key, len(names_shapes))
    params = {
        n: (0.1 * jax.random.normal(k, s, jnp.float32))
        for k, (n, s) in zip(keys, names_shapes)
    }
    # LayerNorm affine params (torch default init: weight=1, bias=0)
    params["g1"] = jnp.ones((1, D_MODEL), jnp.float32)
    params["b1n"] = jnp.zeros((1, D_MODEL), jnp.float32)
    params["g2"] = jnp.ones((1, D_MODEL), jnp.float32)
    params["b2n"] = jnp.zeros((1, D_MODEL), jnp.float32)
    return params


# ---- plain-JAX reference (independent per-head-loop formulation) -------------
def _mha_ref(q_in, kv_in, wq, wk, wv, bq, bk, bv, wo, bo):
    scale = 1.0 / math.sqrt(HEAD_DIM)
    q = jnp.dot(q_in, wq) + bq
    k = jnp.dot(kv_in, wk) + bk
    v = jnp.dot(kv_in, wv) + bv
    heads = []
    for h in range(NHEAD):
        sl = slice(h * HEAD_DIM, (h + 1) * HEAD_DIM)
        s = jnp.dot(q[:, sl] * scale, k[:, sl].T)
        s = s - jnp.max(s, axis=-1, keepdims=True)
        p = jnp.exp(s)
        p = p / jnp.sum(p, axis=-1, keepdims=True)
        heads.append(jnp.dot(p, v[:, sl]))
    o = jnp.concatenate(heads, axis=-1)
    return jnp.dot(o, wo) + bo


def reference(tgt, memory, p):
    x = jnp.transpose(tgt, (1, 0, 2))
    mem = jnp.transpose(memory, (1, 0, 2))

    def per_batch(xb, mb):
        a1 = _mha_ref(xb, xb, p["wq_s"], p["wk_s"], p["wv_s"],
                      p["bq_s"], p["bk_s"], p["bv_s"], p["wo_s"], p["bo_s"])
        xb = _layernorm(xb + a1, p["g1"], p["b1n"])
        a2 = _mha_ref(xb, mb, p["wq_c"], p["wk_c"], p["wv_c"],
                      p["bq_c"], p["bk_c"], p["bv_c"], p["wo_c"], p["bo_c"])
        xb = _layernorm(xb + a2, p["g2"], p["b2n"])
        h = jnp.maximum(jnp.dot(xb, p["w1"]) + p["b1"], 0.0)
        return jnp.dot(h, p["w2"]) + p["b2"]

    out = jax.vmap(per_batch)(x, mem)
    return jnp.transpose(out, (1, 0, 2))


if __name__ == "__main__":
    key = jax.random.PRNGKey(0)
    k_tgt, k_mem, k_par = jax.random.split(key, 3)

    tgt = jax.random.normal(k_tgt, (T_LEN, BATCH, D_MODEL), jnp.float32)
    memory = jax.random.normal(k_mem, (S_LEN, BATCH, D_MODEL), jnp.float32)
    params = init_params(k_par)
    kparams = prepare_params(params)           # one-time host-side weight prep

    fwd = jax.jit(ptransformer_decoder_layer)  # single program: layout ops fuse
    out = jax.block_until_ready(fwd(tgt, memory, kparams))
    assert out.shape == (T_LEN, BATCH, LAST_DIM), out.shape

    ref = jax.block_until_ready(reference(tgt, memory, params))
    assert jnp.allclose(out, ref, rtol=1e-4, atol=1e-4), "mismatch vs reference"

    # TODO(synk): dropout layers are treated as identity (eval mode); attention
    # masks (tgt_mask / memory_mask / key_padding_mask) are not supported.
    print("KERNEL_OK")
</pallas_src>

<mosaic_0001>
module attributes {stable_mosaic.version = 11 : i64} {
  func.func @decoder_layer_kernel(%arg0: memref<2x8x32xf32, #tpu.memory_space<vmem>>, %arg1: memref<2x16x32xf32, #tpu.memory_space<vmem>>, %arg2: memref<32x96xf32, #tpu.memory_space<vmem>>, %arg3: memref<1x96xf32, #tpu.memory_space<vmem>>, %arg4: memref<32x32xf32, #tpu.memory_space<vmem>>, %arg5: memref<1x32xf32, #tpu.memory_space<vmem>>, %arg6: memref<32x32xf32, #tpu.memory_space<vmem>>, %arg7: memref<1x32xf32, #tpu.memory_space<vmem>>, %arg8: memref<32x64xf32, #tpu.memory_space<vmem>>, %arg9: memref<1x64xf32, #tpu.memory_space<vmem>>, %arg10: memref<32x32xf32, #tpu.memory_space<vmem>>, %arg11: memref<1x32xf32, #tpu.memory_space<vmem>>, %arg12: memref<1x32xf32, #tpu.memory_space<vmem>>, %arg13: memref<1x32xf32, #tpu.memory_space<vmem>>, %arg14: memref<1x32xf32, #tpu.memory_space<vmem>>, %arg15: memref<1x32xf32, #tpu.memory_space<vmem>>, %arg16: memref<32x512xf32, #tpu.memory_space<vmem>>, %arg17: memref<1x512xf32, #tpu.memory_space<vmem>>, %arg18: memref<512x64xf32, #tpu.memory_space<vmem>>, %arg19: memref<1x64xf32, #tpu.memory_space<vmem>>, %arg20: memref<2x8x64xf32, #tpu.memory_space<vmem>>) attributes {dimension_semantics = [], scalar_prefetch = 0 : i64, scratch_operands = 0 : i64, tpu.core_type = #tpu.core_type<tc>} {
    %c0 = arith.constant 0 : index
    %c0_0 = arith.constant 0 : index
    %0 = vector.load %arg2[%c0, %c0_0] : memref<32x96xf32, #tpu.memory_space<vmem>>, vector<32x96xf32>
    %c0_1 = arith.constant 0 : index
    %c0_2 = arith.constant 0 : index
    %1 = vector.load %arg3[%c0_1, %c0_2] : memref<1x96xf32, #tpu.memory_space<vmem>>, vector<1x96xf32>
    %c0_3 = arith.constant 0 : index
    %c0_4 = arith.constant 0 : index
    %2 = vector.load %arg4[%c0_3, %c0_4] : memref<32x32xf32, #tpu.memory_space<vmem>>, vector<32x32xf32>
    %c0_5 = arith.constant 0 : index
    %c0_6 = arith.constant 0 : index
    %3 = vector.load %arg5[%c0_5, %c0_6] : memref<1x32xf32, #tpu.memory_space<vmem>>, vector<1x32xf32>
    %c0_7 = arith.constant 0 : index
    %c0_8 = arith.constant 0 : index
    %4 = vector.load %arg6[%c0_7, %c0_8] : memref<32x32xf32, #tpu.memory_space<vmem>>, vector<32x32xf32>
    %c0_9 = arith.constant 0 : index
    %c0_10 = arith.constant 0 : index
    %5 = vector.load %arg7[%c0_9, %c0_10] : memref<1x32xf32, #tpu.memory_space<vmem>>, vector<1x32xf32>
    %c0_11 = arith.constant 0 : index
    %c0_12 = arith.constant 0 : index
    %6 = vector.load %arg8[%c0_11, %c0_12] : memref<32x64xf32, #tpu.memory_space<vmem>>, vector<32x64xf32>
    %c0_13 = arith.constant 0 : index
    %c0_14 = arith.constant 0 : index
    %7 = vector.load %arg9[%c0_13, %c0_14] : memref<1x64xf32, #tpu.memory_space<vmem>>, vector<1x64xf32>
    %c0_15 = arith.constant 0 : index
    %c0_16 = arith.constant 0 : index
    %8 = vector.load %arg10[%c0_15, %c0_16] : memref<32x32xf32, #tpu.memory_space<vmem>>, vector<32x32xf32>
    %c0_17 = arith.constant 0 : index
    %c0_18 = arith.constant 0 : index
    %9 = vector.load %arg11[%c0_17, %c0_18] : memref<1x32xf32, #tpu.memory_space<vmem>>, vector<1x32xf32>
    %c0_19 = arith.constant 0 : index
    %c0_20 = arith.constant 0 : index
    %10 = vector.load %arg12[%c0_19, %c0_20] : memref<1x32xf32, #tpu.memory_space<vmem>>, vector<1x32xf32>
    %c0_21 = arith.constant 0 : index
    %c0_22 = arith.constant 0 : index
    %11 = vector.load %arg13[%c0_21, %c0_22] : memref<1x32xf32, #tpu.memory_space<vmem>>, vector<1x32xf32>
    %c0_23 = arith.constant 0 : index
    %c0_24 = arith.constant 0 : index
    %12 = vector.load %arg14[%c0_23, %c0_24] : memref<1x32xf32, #tpu.memory_space<vmem>>, vector<1x32xf32>
    %c0_25 = arith.constant 0 : index
    %c0_26 = arith.constant 0 : index
    %13 = vector.load %arg15[%c0_25, %c0_26] : memref<1x32xf32, #tpu.memory_space<vmem>>, vector<1x32xf32>
    %c0_27 = arith.constant 0 : index
    %c0_28 = arith.constant 0 : index
    %14 = vector.load %arg16[%c0_27, %c0_28] : memref<32x512xf32, #tpu.memory_space<vmem>>, vector<32x512xf32>
    %c0_29 = arith.constant 0 : index
    %c0_30 = arith.constant 0 : index
    %15 = vector.load %arg17[%c0_29, %c0_30] : memref<1x512xf32, #tpu.memory_space<vmem>>, vector<1x512xf32>
    %c0_31 = arith.constant 0 : index
    %c0_32 = arith.constant 0 : index
    %16 = vector.load %arg18[%c0_31, %c0_32] : memref<512x64xf32, #tpu.memory_space<vmem>>, vector<512x64xf32>
    %c0_33 = arith.constant 0 : index
    %c0_34 = arith.constant 0 : index
    %17 = vector.load %arg19[%c0_33, %c0_34] : memref<1x64xf32, #tpu.memory_space<vmem>>, vector<1x64xf32>
    %c0_35 = arith.constant 0 : index
    %c0_36 = arith.constant 0 : index
    %c0_37 = arith.constant 0 : index
    %18 = vector.load %arg0[%c0_35, %c0_36, %c0_37] : memref<2x8x32xf32, #tpu.memory_space<vmem>>, vector<2x8x32xf32>
    %c0_38 = arith.constant 0 : index
    %c0_39 = arith.constant 0 : index
    %c0_40 = arith.constant 0 : index
    %19 = vector.load %arg1[%c0_38, %c0_39, %c0_40] : memref<2x16x32xf32, #tpu.memory_space<vmem>>, vector<2x16x32xf32>
    %20 = vector.shape_cast %18 : vector<2x8x32xf32> to vector<16x32xf32>
    %21 = vector.shape_cast %19 : vector<2x16x32xf32> to vector<32x32xf32>
    %cst = arith.constant dense<0.000000e+00> : vector<16x96xf32>
    %22 = tpu.matmul %20, %0, %cst {dimension_numbers = #tpu.dot_dimension_numbers<[1], [0], [0], [1], [0, 0, 1, 1], [], []>} : vector<16x32xf32>, vector<32x96xf32>, vector<16x96xf32> -> vector<16x96xf32>
    %23 = vector.broadcast %1 : vector<1x96xf32> to vector<16x96xf32>
    %24 = arith.addf %22, %23 : vector<16x96xf32>
    %25 = vector.extract_strided_slice %24 {offsets = [0, 0], sizes = [16, 32], strides = [1, 1]} : vector<16x96xf32> to vector<16x32xf32>
    %26 = vector.extract_strided_slice %24 {offsets = [0, 32], sizes = [16, 32], strides = [1, 1]} : vector<16x96xf32> to vector<16x32xf32>
    %27 = vector.extract_strided_slice %24 {offsets = [0, 64], sizes = [16, 32], strides = [1, 1]} : vector<16x96xf32> to vector<16x32xf32>
    %28 = vector.extract_strided_slice %25 {offsets = [0, 0], sizes = [16, 8], strides = [1, 1]} : vector<16x32xf32> to vector<16x8xf32>
    %29 = vector.shape_cast %28 : vector<16x8xf32> to vector<2x8x8xf32>
    %30 = vector.extract_strided_slice %26 {offsets = [0, 0], sizes = [16, 8], strides = [1, 1]} : vector<16x32xf32> to vector<16x8xf32>
    %31 = vector.shape_cast %30 : vector<16x8xf32> to vector<2x8x8xf32>
    %32 = vector.extract_strided_slice %27 {offsets = [0, 0], sizes = [16, 8], strides = [1, 1]} : vector<16x32xf32> to vector<16x8xf32>
    %33 = vector.shape_cast %32 : vector<16x8xf32> to vector<2x8x8xf32>
    "tpu.trace_start"() <{level = 10 : i32, message = "bqd,bkd->bqk"}> : () -> ()
    %cst_41 = arith.constant dense<0.000000e+00> : vector<2x8x8xf32>
    %34 = tpu.matmul %29, %31, %cst_41 {dimension_numbers = #tpu.dot_dimension_numbers<[2], [2], [1], [1], [0, 0, 0, 1, 1, 1], [0], [0]>} : vector<2x8x8xf32>, vector<2x8x8xf32>, vector<2x8x8xf32> -> vector<2x8x8xf32>
    "tpu.trace_stop"() : () -> ()
    %cst_42 = arith.constant dense<0xFF800000> : vector<2x8xf32>
    %35 = vector.multi_reduction <maximumf>, %34, %cst_42 [2] : vector<2x8x8xf32> to vector<2x8xf32>
    %36 = vector.shape_cast %35 : vector<2x8xf32> to vector<2x8x1xf32>
    %37 = vector.broadcast %36 : vector<2x8x1xf32> to vector<2x8x8xf32>
    %38 = arith.subf %34, %37 : vector<2x8x8xf32>
    %39 = math.exp %38 : vector<2x8x8xf32>
    %cst_43 = arith.constant dense<0.000000e+00> : vector<2x8xf32>
    %40 = vector.multi_reduction <add>, %39, %cst_43 [2] : vector<2x8x8xf32> to vector<2x8xf32>
    %41 = vector.shape_cast %40 : vector<2x8xf32> to vector<2x8x1xf32>
    %cst_44 = arith.constant 1.000000e+00 : f32
    %42 = vector.broadcast %cst_44 : f32 to vector<2x8x1xf32>
    %43 = arith.divf %42, %41 : vector<2x8x1xf32>
    %44 = vector.broadcast %43 : vector<2x8x1xf32> to vector<2x8x8xf32>
    %45 = arith.mulf %39, %44 : vector<2x8x8xf32>
    "tpu.trace_start"() <{level = 10 : i32, message = "bqk,bkd->bqd"}> : () -> ()
    %cst_45 = arith.constant dense<0.000000e+00> : vector<2x8x8xf32>
    %46 = tpu.matmul %45, %33, %cst_45 {dimension_numbers = #tpu.dot_dimension_numbers<[2], [1], [1], [2], [0, 0, 0, 1, 1, 2], [0], [0]>} : vector<2x8x8xf32>, vector<2x8x8xf32>, vector<2x8x8xf32> -> vector<2x8x8xf32>
    "tpu.trace_stop"() : () -> ()
    %47 = vector.shape_cast %46 : vector<2x8x8xf32> to vector<16x8xf32>
    %48 = vector.extract_strided_slice %25 {offsets = [0, 8], sizes = [16, 8], strides = [1, 1]} : vector<16x32xf32> to vector<16x8xf32>
    %49 = vector.shape_cast %48 : vector<16x8xf32> to vector<2x8x8xf32>
    %50 = vector.extract_strided_slice %26 {offsets = [0, 8], sizes = [16, 8], strides = [1, 1]} : vector<16x32xf32> to vector<16x8xf32>
    %51 = vector.shape_cast %50 : vector<16x8xf32> to vector<2x8x8xf32>
    %52 = vector.extract_strided_slice %27 {offsets = [0, 8], sizes = [16, 8], strides = [1, 1]} : vector<16x32xf32> to vector<16x8xf32>
    %53 = vector.shape_cast %52 : vector<16x8xf32> to vector<2x8x8xf32>
    "tpu.trace_start"() <{level = 10 : i32, message = "bqd,bkd->bqk"}> : () -> ()
    %cst_46 = arith.constant dense<0.000000e+00> : vector<2x8x8xf32>
    %54 = tpu.matmul %49, %51, %cst_46 {dimension_numbers = #tpu.dot_dimension_numbers<[2], [2], [1], [1], [0, 0, 0, 1, 1, 1], [0], [0]>} : vector<2x8x8xf32>, vector<2x8x8xf32>, vector<2x8x8xf32> -> vector<2x8x8xf32>
    "tpu.trace_stop"() : () -> ()
    %cst_47 = arith.constant dense<0xFF800000> : vector<2x8xf32>
    %55 = vector.multi_reduction <maximumf>, %54, %cst_47 [2] : vector<2x8x8xf32> to vector<2x8xf32>
    %56 = vector.shape_cast %55 : vector<2x8xf32> to vector<2x8x1xf32>
    %57 = vector.broadcast %56 : vector<2x8x1xf32> to vector<2x8x8xf32>
    %58 = arith.subf %54, %57 : vector<2x8x8xf32>
    %59 = math.exp %58 : vector<2x8x8xf32>
    %cst_48 = arith.constant dense<0.000000e+00> : vector<2x8xf32>
    %60 = vector.multi_reduction <add>, %59, %cst_48 [2] : vector<2x8x8xf32> to vector<2x8xf32>
    %61 = vector.shape_cast %60 : vector<2x8xf32> to vector<2x8x1xf32>
    %cst_49 = arith.constant 1.000000e+00 : f32
    %62 = vector.broadcast %cst_49 : f32 to vector<2x8x1xf32>
    %63 = arith.divf %62, %61 : vector<2x8x1xf32>
    %64 = vector.broadcast %63 : vector<2x8x1xf32> to vector<2x8x8xf32>
    %65 = arith.mulf %59, %64 : vector<2x8x8xf32>
    "tpu.trace_start"() <{level = 10 : i32, message = "bqk,bkd->bqd"}> : () -> ()
    %cst_50 = arith.constant dense<0.000000e+00> : vector<2x8x8xf32>
    %66 = tpu.matmul %65, %53, %cst_50 {dimension_numbers = #tpu.dot_dimension_numbers<[2], [1], [1], [2], [0, 0, 0, 1, 1, 2], [0], [0]>} : vector<2x8x8xf32>, vector<2x8x8xf32>, vector<2x8x8xf32> -> vector<2x8x8xf32>
    "tpu.trace_stop"() : () -> ()
    %67 = vector.shape_cast %66 : vector<2x8x8xf32> to vector<16x8xf32>
    %68 = vector.extract_strided_slice %25 {offsets = [0, 16], sizes = [16, 8], strides = [1, 1]} : vector<16x32xf32> to vector<16x8xf32>
    %69 = vector.shape_cast %68 : vector<16x8xf32> to vector<2x8x8xf32>
    %70 = vector.extract_strided_slice %26 {offsets = [0, 16], sizes = [16, 8], strides = [1, 1]} : vector<16x32xf32> to vector<16x8xf32>
    %71 = vector.shape_cast %70 : vector<16x8xf32> to vector<2x8x8xf32>
    %72 = vector.extract_strided_slice %27 {offsets = [0, 16], sizes = [16, 8], strides = [1, 1]} : vector<16x32xf32> to vector<16x8xf32>
    %73 = vector.shape_cast %72 : vector<16x8xf32> to vector<2x8x8xf32>
    "tpu.trace_start"() <{level = 10 : i32, message = "bqd,bkd->bqk"}> : () -> ()
    %cst_51 = arith.constant dense<0.000000e+00> : vector<2x8x8xf32>
    %74 = tpu.matmul %69, %71, %cst_51 {dimension_numbers = #tpu.dot_dimension_numbers<[2], [2], [1], [1], [0, 0, 0, 1, 1, 1], [0], [0]>} : vector<2x8x8xf32>, vector<2x8x8xf32>, vector<2x8x8xf32> -> vector<2x8x8xf32>
    "tpu.trace_stop"() : () -> ()
    %cst_52 = arith.constant dense<0xFF800000> : vector<2x8xf32>
    %75 = vector.multi_reduction <maximumf>, %74, %cst_52 [2] : vector<2x8x8xf32> to vector<2x8xf32>
    %76 = vector.shape_cast %75 : vector<2x8xf32> to vector<2x8x1xf32>
    %77 = vector.broadcast %76 : vector<2x8x1xf32> to vector<2x8x8xf32>
    %78 = arith.subf %74, %77 : vector<2x8x8xf32>
    %79 = math.exp %78 : vector<2x8x8xf32>
    %cst_53 = arith.constant dense<0.000000e+00> : vector<2x8xf32>
    %80 = vector.multi_reduction <add>, %79, %cst_53 [2] : vector<2x8x8xf32> to vector<2x8xf32>
    %81 = vector.shape_cast %80 : vector<2x8xf32> to vector<2x8x1xf32>
    %cst_54 = arith.constant 1.000000e+00 : f32
    %82 = vector.broadcast %cst_54 : f32 to vector<2x8x1xf32>
    %83 = arith.divf %82, %81 : vector<2x8x1xf32>
    %84 = vector.broadcast %83 : vector<2x8x1xf32> to vector<2x8x8xf32>
    %85 = arith.mulf %79, %84 : vector<2x8x8xf32>
    "tpu.trace_start"() <{level = 10 : i32, message = "bqk,bkd->bqd"}> : () -> ()
    %cst_55 = arith.constant dense<0.000000e+00> : vector<2x8x8xf32>
    %86 = tpu.matmul %85, %73, %cst_55 {dimension_numbers = #tpu.dot_dimension_numbers<[2], [1], [1], [2], [0, 0, 0, 1, 1, 2], [0], [0]>} : vector<2x8x8xf32>, vector<2x8x8xf32>, vector<2x8x8xf32> -> vector<2x8x8xf32>
    "tpu.trace_stop"() : () -> ()
    %87 = vector.shape_cast %86 : vector<2x8x8xf32> to vector<16x8xf32>
    %88 = vector.extract_strided_slice %25 {offsets = [0, 24], sizes = [16, 8], strides = [1, 1]} : vector<16x32xf32> to vector<16x8xf32>
    %89 = vector.shape_cast %88 : vector<16x8xf32> to vector<2x8x8xf32>
    %90 = vector.extract_strided_slice %26 {offsets = [0, 24], sizes = [16, 8], strides = [1, 1]} : vector<16x32xf32> to vector<16x8xf32>
    %91 = vector.shape_cast %90 : vector<16x8xf32> to vector<2x8x8xf32>
    %92 = vector.extract_strided_slice %27 {offsets = [0, 24], sizes = [16, 8], strides = [1, 1]} : vector<16x32xf32> to vector<16x8xf32>
    %93 = vector.shape_cast %92 : vector<16x8xf32> to vector<2x8x8xf32>
    "tpu.trace_start"() <{level = 10 : i32, message = "bqd,bkd->bqk"}> : () -> ()
    %cst_56 = arith.constant dense<0.000000e+00> : vector<2x8x8xf32>
    %94 = tpu.matmul %89, %91, %cst_56 {dimension_numbers = #tpu.dot_dimension_numbers<[2], [2], [1], [1], [0, 0, 0, 1, 1, 1], [0], [0]>} : vector<2x8x8xf32>, vector<2x8x8xf32>, vector<2x8x8xf32> -> vector<2x8x8xf32>
    "tpu.trace_stop"() : () -> ()
    %cst_57 = arith.constant dense<0xFF800000> : vector<2x8xf32>
    %95 = vector.multi_reduction <maximumf>, %94, %cst_57 [2] : vector<2x8x8xf32> to vector<2x8xf32>
    %96 = vector.shape_cast %95 : vector<2x8xf32> to vector<2x8x1xf32>
    %97 = vector.broadcast %96 : vector<2x8x1xf32> to vector<2x8x8xf32>
    %98 = arith.subf %94, %97 : vector<2x8x8xf32>
    %99 = math.exp %98 : vector<2x8x8xf32>
    %cst_58 = arith.constant dense<0.000000e+00> : vector<2x8xf32>
    %100 = vector.multi_reduction <add>, %99, %cst_58 [2] : vector<2x8x8xf32> to vector<2x8xf32>
    %101 = vector.shape_cast %100 : vector<2x8xf32> to vector<2x8x1xf32>
    %cst_59 = arith.constant 1.000000e+00 : f32
    %102 = vector.broadcast %cst_59 : f32 to vector<2x8x1xf32>
    %103 = arith.divf %102, %101 : vector<2x8x1xf32>
    %104 = vector.broadcast %103 : vector<2x8x1xf32> to vector<2x8x8xf32>
    %105 = arith.mulf %99, %104 : vector<2x8x8xf32>
    "tpu.trace_start"() <{level = 10 : i32, message = "bqk,bkd->bqd"}> : () -> ()
    %cst_60 = arith.constant dense<0.000000e+00> : vector<2x8x8xf32>
    %106 = tpu.matmul %105, %93, %cst_60 {dimension_numbers = #tpu.dot_dimension_numbers<[2], [1], [1], [2], [0, 0, 0, 1, 1, 2], [0], [0]>} : vector<2x8x8xf32>, vector<2x8x8xf32>, vector<2x8x8xf32> -> vector<2x8x8xf32>
    "tpu.trace_stop"() : () -> ()
    %107 = vector.shape_cast %106 : vector<2x8x8xf32> to vector<16x8xf32>
    %108 = tpu.concatenate %47, %67, %87, %107 in 1 : vector<16x8xf32>, vector<16x8xf32>, vector<16x8xf32>, vector<16x8xf32> -> vector<16x32xf32>
    %cst_61 = arith.constant dense<0.000000e+00> : vector<16x32xf32>
    %109 = tpu.matmul %108, %2, %cst_61 {dimension_numbers = #tpu.dot_dimension_numbers<[1], [0], [0], [1], [0, 0, 1, 1], [], []>} : vector<16x32xf32>, vector<32x32xf32>, vector<16x32xf32> -> vector<16x32xf32>
    %110 = vector.broadcast %3 : vector<1x32xf32> to vector<16x32xf32>
    %111 = arith.addf %109, %110 : vector<16x32xf32>
    %112 = arith.addf %20, %111 : vector<16x32xf32>
    %cst_62 = arith.constant dense<0.000000e+00> : vector<16xf32>
    %113 = vector.multi_reduction <add>, %112, %cst_62 [1] : vector<16x32xf32> to vector<16xf32>
    %114 = vector.shape_cast %113 : vector<16xf32> to vector<16x1xf32>
    %cst_63 = arith.constant 3.200000e+01 : f32
    %115 = vector.broadcast %cst_63 : f32 to vector<16x1xf32>
    %116 = arith.divf %114, %115 : vector<16x1xf32>
    %117 = vector.broadcast %116 : vector<16x1xf32> to vector<16x32xf32>
    %118 = arith.subf %112, %117 : vector<16x32xf32>
    %119 = arith.mulf %118, %118 : vector<16x32xf32>
    %cst_64 = arith.constant dense<0.000000e+00> : vector<16xf32>
    %120 = vector.multi_reduction <add>, %119, %cst_64 [1] : vector<16x32xf32> to vector<16xf32>
    %121 = vector.shape_cast %120 : vector<16xf32> to vector<16x1xf32>
    %cst_65 = arith.constant 3.200000e+01 : f32
    %122 = vector.broadcast %cst_65 : f32 to vector<16x1xf32>
    %123 = arith.divf %121, %122 : vector<16x1xf32>
    %124 = vector.broadcast %116 : vector<16x1xf32> to vector<16x32xf32>
    %125 = arith.subf %112, %124 : vector<16x32xf32>
    %cst_66 = arith.constant 9.99999974E-6 : f32
    %126 = vector.broadcast %cst_66 : f32 to vector<16x1xf32>
    %127 = arith.addf %123, %126 : vector<16x1xf32>
    %128 = math.rsqrt %127 : vector<16x1xf32>
    %129 = vector.broadcast %128 : vector<16x1xf32> to vector<16x32xf32>
    %130 = arith.mulf %125, %129 : vector<16x32xf32>
    %131 = vector.broadcast %10 : vector<1x32xf32> to vector<16x32xf32>
    %132 = arith.mulf %130, %131 : vector<16x32xf32>
    %133 = vector.broadcast %11 : vector<1x32xf32> to vector<16x32xf32>
    %134 = arith.addf %132, %133 : vector<16x32xf32>
    %cst_67 = arith.constant dense<0.000000e+00> : vector<16x32xf32>
    %135 = tpu.matmul %134, %4, %cst_67 {dimension_numbers = #tpu.dot_dimension_numbers<[1], [0], [0], [1], [0, 0, 1, 1], [], []>} : vector<16x32xf32>, vector<32x32xf32>, vector<16x32xf32> -> vector<16x32xf32>
    %136 = vector.broadcast %5 : vector<1x32xf32> to vector<16x32xf32>
    %137 = arith.addf %135, %136 : vector<16x32xf32>
    %cst_68 = arith.constant dense<0.000000e+00> : vector<32x64xf32>
    %138 = tpu.matmul %21, %6, %cst_68 {dimension_numbers = #tpu.dot_dimension_numbers<[1], [0], [0], [1], [0, 0, 1, 1], [], []>} : vector<32x32xf32>, vector<32x64xf32>, vector<32x64xf32> -> vector<32x64xf32>
    %139 = vector.broadcast %7 : vector<1x64xf32> to vector<32x64xf32>
    %140 = arith.addf %138, %139 : vector<32x64xf32>
    %141 = vector.extract_strided_slice %140 {offsets = [0, 0], sizes = [32, 32], strides = [1, 1]} : vector<32x64xf32> to vector<32x32xf32>
    %142 = vector.extract_strided_slice %140 {offsets = [0, 32], sizes = [32, 32], strides = [1, 1]} : vector<32x64xf32> to vector<32x32xf32>
    %143 = vector.extract_strided_slice %137 {offsets = [0, 0], sizes = [16, 8], strides = [1, 1]} : vector<16x32xf32> to vector<16x8xf32>
    %144 = vector.shape_cast %143 : vector<16x8xf32> to vector<2x8x8xf32>
    %145 = vector.extract_strided_slice %141 {offsets = [0, 0], sizes = [32, 8], strides = [1, 1]} : vector<32x32xf32> to vector<32x8xf32>
    %146 = vector.shape_cast %145 : vector<32x8xf32> to vector<2x16x8xf32>
    %147 = vector.extract_strided_slice %142 {offsets = [0, 0], sizes = [32, 8], strides = [1, 1]} : vector<32x32xf32> to vector<32x8xf32>
    %148 = vector.shape_cast %147 : vector<32x8xf32> to vector<2x16x8xf32>
    "tpu.trace_start"() <{level = 10 : i32, message = "bqd,bkd->bqk"}> : () -> ()
    %cst_69 = arith.constant dense<0.000000e+00> : vector<2x8x16xf32>
    %149 = tpu.matmul %144, %146, %cst_69 {dimension_numbers = #tpu.dot_dimension_numbers<[2], [2], [1], [1], [0, 0, 0, 1, 1, 1], [0], [0]>} : vector<2x8x8xf32>, vector<2x16x8xf32>, vector<2x8x16xf32> -> vector<2x8x16xf32>
    "tpu.trace_stop"() : () -> ()
    %cst_70 = arith.constant dense<0xFF800000> : vector<2x8xf32>
    %150 = vector.multi_reduction <maximumf>, %149, %cst_70 [2] : vector<2x8x16xf32> to vector<2x8xf32>
    %151 = vector.shape_cast %150 : vector<2x8xf32> to vector<2x8x1xf32>
    %152 = vector.broadcast %151 : vector<2x8x1xf32> to vector<2x8x16xf32>
    %153 = arith.subf %149, %152 : vector<2x8x16xf32>
    %154 = math.exp %153 : vector<2x8x16xf32>
    %cst_71 = arith.constant dense<0.000000e+00> : vector<2x8xf32>
    %155 = vector.multi_reduction <add>, %154, %cst_71 [2] : vector<2x8x16xf32> to vector<2x8xf32>
    %156 = vector.shape_cast %155 : vector<2x8xf32> to vector<2x8x1xf32>
    %cst_72 = arith.constant 1.000000e+00 : f32
    %157 = vector.broadcast %cst_72 : f32 to vector<2x8x1xf32>
    %158 = arith.divf %157, %156 : vector<2x8x1xf32>
    %159 = vector.broadcast %158 : vector<2x8x1xf32> to vector<2x8x16xf32>
    %160 = arith.mulf %154, %159 : vector<2x8x16xf32>
    "tpu.trace_start"() <{level = 10 : i32, message = "bqk,bkd->bqd"}> : () -> ()
    %cst_73 = arith.constant dense<0.000000e+00> : vector<2x8x8xf32>
    %161 = tpu.matmul %160, %148, %cst_73 {dimension_numbers = #tpu.dot_dimension_numbers<[2], [1], [1], [2], [0, 0, 0, 1, 1, 2], [0], [0]>} : vector<2x8x16xf32>, vector<2x16x8xf32>, vector<2x8x8xf32> -> vector<2x8x8xf32>
    "tpu.trace_stop"() : () -> ()
    %162 = vector.shape_cast %161 : vector<2x8x8xf32> to vector<16x8xf32>
    %163 = vector.extract_strided_slice %137 {offsets = [0, 8], sizes = [16, 8], strides = [1, 1]} : vector<16x32xf32> to vector<16x8xf32>
    %164 = vector.shape_cast %163 : vector<16x8xf32> to vector<2x8x8xf32>
    %165 = vector.extract_strided_slice %141 {offsets = [0, 8], sizes = [32, 8], strides = [1, 1]} : vector<32x32xf32> to vector<32x8xf32>
    %166 = vector.shape_cast %165 : vector<32x8xf32> to vector<2x16x8xf32>
    %167 = vector.extract_strided_slice %142 {offsets = [0, 8], sizes = [32, 8], strides = [1, 1]} : vector<32x32xf32> to vector<32x8xf32>
    %168 = vector.shape_cast %167 : vector<32x8xf32> to vector<2x16x8xf32>
    "tpu.trace_start"() <{level = 10 : i32, message = "bqd,bkd->bqk"}> : () -> ()
    %cst_74 = arith.constant dense<0.000000e+00> : vector<2x8x16xf32>
    %169 = tpu.matmul %164, %166, %cst_74 {dimension_numbers = #tpu.dot_dimension_numbers<[2], [2], [1], [1], [0, 0, 0, 1, 1, 1], [0], [0]>} : vector<2x8x8xf32>, vector<2x16x8xf32>, vector<2x8x16xf32> -> vector<2x8x16xf32>
    "tpu.trace_stop"() : () -> ()
    %cst_75 = arith.constant dense<0xFF800000> : vector<2x8xf32>
    %170 = vector.multi_reduction <maximumf>, %169, %cst_75 [2] : vector<2x8x16xf32> to vector<2x8xf32>
    %171 = vector.shape_cast %170 : vector<2x8xf32> to vector<2x8x1xf32>
    %172 = vector.broadcast %171 : vector<2x8x1xf32> to vector<2x8x16xf32>
    %173 = arith.subf %169, %172 : vector<2x8x16xf32>
    %174 = math.exp %173 : vector<2x8x16xf32>
    %cst_76 = arith.constant dense<0.000000e+00> : vector<2x8xf32>
    %175 = vector.multi_reduction <add>, %174, %cst_76 [2] : vector<2x8x16xf32> to vector<2x8xf32>
    %176 = vector.shape_cast %175 : vector<2x8xf32> to vector<2x8x1xf32>
    %cst_77 = arith.constant 1.000000e+00 : f32
    %177 = vector.broadcast %cst_77 : f32 to vector<2x8x1xf32>
    %178 = arith.divf %177, %176 : vector<2x8x1xf32>
    %179 = vector.broadcast %178 : vector<2x8x1xf32> to vector<2x8x16xf32>
    %180 = arith.mulf %174, %179 : vector<2x8x16xf32>
    "tpu.trace_start"() <{level = 10 : i32, message = "bqk,bkd->bqd"}> : () -> ()
    %cst_78 = arith.constant dense<0.000000e+00> : vector<2x8x8xf32>
    %181 = tpu.matmul %180, %168, %cst_78 {dimension_numbers = #tpu.dot_dimension_numbers<[2], [1], [1], [2], [0, 0, 0, 1, 1, 2], [0], [0]>} : vector<2x8x16xf32>, vector<2x16x8xf32>, vector<2x8x8xf32> -> vector<2x8x8xf32>
    "tpu.trace_stop"() : () -> ()
    %182 = vector.shape_cast %181 : vector<2x8x8xf32> to vector<16x8xf32>
    %183 = vector.extract_strided_slice %137 {offsets = [0, 16], sizes = [16, 8], strides = [1, 1]} : vector<16x32xf32> to vector<16x8xf32>
    %184 = vector.shape_cast %183 : vector<16x8xf32> to vector<2x8x8xf32>
    %185 = vector.extract_strided_slice %141 {offsets = [0, 16], sizes = [32, 8], strides = [1, 1]} : vector<32x32xf32> to vector<32x8xf32>
    %186 = vector.shape_cast %185 : vector<32x8xf32> to vector<2x16x8xf32>
    %187 = vector.extract_strided_slice %142 {offsets = [0, 16], sizes = [32, 8], strides = [1, 1]} : vector<32x32xf32> to vector<32x8xf32>
    %188 = vector.shape_cast %187 : vector<32x8xf32> to vector<2x16x8xf32>
    "tpu.trace_start"() <{level = 10 : i32, message = "bqd,bkd->bqk"}> : () -> ()
    %cst_79 = arith.constant dense<0.000000e+00> : vector<2x8x16xf32>
    %189 = tpu.matmul %184, %186, %cst_79 {dimension_numbers = #tpu.dot_dimension_numbers<[2], [2], [1], [1], [0, 0, 0, 1, 1, 1], [0], [0]>} : vector<2x8x8xf32>, vector<2x16x8xf32>, vector<2x8x16xf32> -> vector<2x8x16xf32>
    "tpu.trace_stop"() : () -> ()
    %cst_80 = arith.constant dense<0xFF800000> : vector<2x8xf32>
    %190 = vector.multi_reduction <maximumf>, %189, %cst_80 [2] : vector<2x8x16xf32> to vector<2x8xf32>
    %191 = vector.shape_cast %190 : vector<2x8xf32> to vector<2x8x1xf32>
    %192 = vector.broadcast %191 : vector<2x8x1xf32> to vector<2x8x16xf32>
    %193 = arith.subf %189, %192 : vector<2x8x16xf32>
    %194 = math.exp %193 : vector<2x8x16xf32>
    %cst_81 = arith.constant dense<0.000000e+00> : vector<2x8xf32>
    %195 = vector.multi_reduction <add>, %194, %cst_81 [2] : vector<2x8x16xf32> to vector<2x8xf32>
    %196 = vector.shape_cast %195 : vector<2x8xf32> to vector<2x8x1xf32>
    %cst_82 = arith.constant 1.000000e+00 : f32
    %197 = vector.broadcast %cst_82 : f32 to vector<2x8x1xf32>
    %198 = arith.divf %197, %196 : vector<2x8x1xf32>
    %199 = vector.broadcast %198 : vector<2x8x1xf32> to vector<2x8x16xf32>
    %200 = arith.mulf %194, %199 : vector<2x8x16xf32>
    "tpu.trace_start"() <{level = 10 : i32, message = "bqk,bkd->bqd"}> : () -> ()
    %cst_83 = arith.constant dense<0.000000e+00> : vector<2x8x8xf32>
    %201 = tpu.matmul %200, %188, %cst_83 {dimension_numbers = #tpu.dot_dimension_numbers<[2], [1], [1], [2], [0, 0, 0, 1, 1, 2], [0], [0]>} : vector<2x8x16xf32>, vector<2x16x8xf32>, vector<2x8x8xf32> -> vector<2x8x8xf32>
    "tpu.trace_stop"() : () -> ()
    %202 = vector.shape_cast %201 : vector<2x8x8xf32> to vector<16x8xf32>
    %203 = vector.extract_strided_slice %137 {offsets = [0, 24], sizes = [16, 8], strides = [1, 1]} : vector<16x32xf32> to vector<16x8xf32>
    %204 = vector.shape_cast %203 : vector<16x8xf32> to vector<2x8x8xf32>
    %205 = vector.extract_strided_slice %141 {offsets = [0, 24], sizes = [32, 8], strides = [1, 1]} : vector<32x32xf32> to vector<32x8xf32>
    %206 = vector.shape_cast %205 : vector<32x8xf32> to vector<2x16x8xf32>
    %207 = vector.extract_strided_slice %142 {offsets = [0, 24], sizes = [32, 8], strides = [1, 1]} : vector<32x32xf32> to vector<32x8xf32>
    %208 = vector.shape_cast %207 : vector<32x8xf32> to vector<2x16x8xf32>
    "tpu.trace_start"() <{level = 10 : i32, message = "bqd,bkd->bqk"}> : () -> ()
    %cst_84 = arith.constant dense<0.000000e+00> : vector<2x8x16xf32>
    %209 = tpu.matmul %204, %206, %cst_84 {dimension_numbers = #tpu.dot_dimension_numbers<[2], [2], [1], [1], [0, 0, 0, 1, 1, 1], [0], [0]>} : vector<2x8x8xf32>, vector<2x16x8xf32>, vector<2x8x16xf32> -> vector<2x8x16xf32>
    "tpu.trace_stop"() : () -> ()
    %cst_85 = arith.constant dense<0xFF800000> : vector<2x8xf32>
    %210 = vector.multi_reduction <maximumf>, %209, %cst_85 [2] : vector<2x8x16xf32> to vector<2x8xf32>
    %211 = vector.shape_cast %210 : vector<2x8xf32> to vector<2x8x1xf32>
    %212 = vector.broadcast %211 : vector<2x8x1xf32> to vector<2x8x16xf32>
    %213 = arith.subf %209, %212 : vector<2x8x16xf32>
    %214 = math.exp %213 : vector<2x8x16xf32>
    %cst_86 = arith.constant dense<0.000000e+00> : vector<2x8xf32>
    %215 = vector.multi_reduction <add>, %214, %cst_86 [2] : vector<2x8x16xf32> to vector<2x8xf32>
    %216 = vector.shape_cast %215 : vector<2x8xf32> to vector<2x8x1xf32>
    %cst_87 = arith.constant 1.000000e+00 : f32
    %217 = vector.broadcast %cst_87 : f32 to vector<2x8x1xf32>
    %218 = arith.divf %217, %216 : vector<2x8x1xf32>
    %219 = vector.broadcast %218 : vector<2x8x1xf32> to vector<2x8x16xf32>
    %220 = arith.mulf %214, %219 : vector<2x8x16xf32>
    "tpu.trace_start"() <{level = 10 : i32, message = "bqk,bkd->bqd"}> : () -> ()
    %cst_88 = arith.constant dense<0.000000e+00> : vector<2x8x8xf32>
    %221 = tpu.matmul %220, %208, %cst_88 {dimension_numbers = #tpu.dot_dimension_numbers<[2], [1], [1], [2], [0, 0, 0, 1, 1, 2], [0], [0]>} : vector<2x8x16xf32>, vector<2x16x8xf32>, vector<2x8x8xf32> -> vector<2x8x8xf32>
    "tpu.trace_stop"() : () -> ()
    %222 = vector.shape_cast %221 : vector<2x8x8xf32> to vector<16x8xf32>
    %223 = tpu.concatenate %162, %182, %202, %222 in 1 : vector<16x8xf32>, vector<16x8xf32>, vector<16x8xf32>, vector<16x8xf32> -> vector<16x32xf32>
    %cst_89 = arith.constant dense<0.000000e+00> : vector<16x32xf32>
    %224 = tpu.matmul %223, %8, %cst_89 {dimension_numbers = #tpu.dot_dimension_numbers<[1], [0], [0], [1], [0, 0, 1, 1], [], []>} : vector<16x32xf32>, vector<32x32xf32>, vector<16x32xf32> -> vector<16x32xf32>
    %225 = vector.broadcast %9 : vector<1x32xf32> to vector<16x32xf32>
    %226 = arith.addf %224, %225 : vector<16x32xf32>
    %227 = arith.addf %134, %226 : vector<16x32xf32>
    %cst_90 = arith.constant dense<0.000000e+00> : vector<16xf32>
    %228 = vector.multi_reduction <add>, %227, %cst_90 [1] : vector<16x32xf32> to vector<16xf32>
    %229 = vector.shape_cast %228 : vector<16xf32> to vector<16x1xf32>
    %cst_91 = arith.constant 3.200000e+01 : f32
    %230 = vector.broadcast %cst_91 : f32 to vector<16x1xf32>
    %231 = arith.divf %229, %230 : vector<16x1xf32>
    %232 = vector.broadcast %231 : vector<16x1xf32> to vector<16x32xf32>
    %233 = arith.subf %227, %232 : vector<16x32xf32>
    %234 = arith.mulf %233, %233 : vector<16x32xf32>
    %cst_92 = arith.constant dense<0.000000e+00> : vector<16xf32>
    %235 = vector.multi_reduction <add>, %234, %cst_92 [1] : vector<16x32xf32> to vector<16xf32>
    %236 = vector.shape_cast %235 : vector<16xf32> to vector<16x1xf32>
    %cst_93 = arith.constant 3.200000e+01 : f32
    %237 = vector.broadcast %cst_93 : f32 to vector<16x1xf32>
    %238 = arith.divf %236, %237 : vector<16x1xf32>
    %239 = vector.broadcast %231 : vector<16x1xf32> to vector<16x32xf32>
    %240 = arith.subf %227, %239 : vector<16x32xf32>
    %cst_94 = arith.constant 9.99999974E-6 : f32
    %241 = vector.broadcast %cst_94 : f32 to vector<16x1xf32>
    %242 = arith.addf %238, %241 : vector<16x1xf32>
    %243 = math.rsqrt %242 : vector<16x1xf32>
    %244 = vector.broadcast %243 : vector<16x1xf32> to vector<16x32xf32>
    %245 = arith.mulf %240, %244 : vector<16x32xf32>
    %246 = vector.broadcast %12 : vector<1x32xf32> to vector<16x32xf32>
    %247 = arith.mulf %245, %246 : vector<16x32xf32>
    %248 = vector.broadcast %13 : vector<1x32xf32> to vector<16x32xf32>
    %249 = arith.addf %247, %248 : vector<16x32xf32>
    %cst_95 = arith.constant dense<0.000000e+00> : vector<16x512xf32>
    %250 = tpu.matmul %249, %14, %cst_95 {dimension_numbers = #tpu.dot_dimension_numbers<[1], [0], [0], [1], [0, 0, 1, 1], [], []>} : vector<16x32xf32>, vector<32x512xf32>, vector<16x512xf32> -> vector<16x512xf32>
    %251 = vector.broadcast %15 : vector<1x512xf32> to vector<16x512xf32>
    %252 = arith.addf %250, %251 : vector<16x512xf32>
    %cst_96 = arith.constant 0.000000e+00 : f32
    %253 = vector.broadcast %cst_96 : f32 to vector<16x512xf32>
    %254 = arith.maximumf %252, %253 : vector<16x512xf32>
    %cst_97 = arith.constant dense<0.000000e+00> : vector<16x64xf32>
    %255 = tpu.matmul %254, %16, %cst_97 {dimension_numbers = #tpu.dot_dimension_numbers<[1], [0], [0], [1], [0, 0, 1, 1], [], []>} : vector<16x512xf32>, vector<512x64xf32>, vector<16x64xf32> -> vector<16x64xf32>
    %256 = vector.broadcast %17 : vector<1x64xf32> to vector<16x64xf32>
    %257 = arith.addf %255, %256 : vector<16x64xf32>
    %258 = vector.shape_cast %257 : vector<16x64xf32> to vector<2x8x64xf32>
    %c0_98 = arith.constant 0 : index
    %c0_99 = arith.constant 0 : index
    %c0_100 = arith.constant 0 : index
    %259 = vector.load %arg20[%c0_98, %c0_99, %c0_100] : memref<2x8x64xf32, #tpu.memory_space<vmem>>, vector<2x8x64xf32>
    tpu.vector_store %arg20[%c0_98, %c0_99, %c0_100], %258 {strides = array<i32>} : memref<2x8x64xf32, #tpu.memory_space<vmem>>, vector<2x8x64xf32>,
    return
  }
}

</mosaic_0001>

<bundles_post_ra>
// kernel: ptransformer_decoder_layer.1
= control target key start
LH: loop header
LB: loop body
LE: loop exit
PB: predicated region body
PF: predicated region fallthrough
CT: control target
= control target key end

     0   :  { %vm188_vm0 = vcmask 261120   ;;  %v4697_v8 = vmov 0.0   ;;  %vm4698_vm1 = vmmov 0   ;;  %vm273_vm2 = vcmask 64512   ;;  %s4700_s24 = smov 64   ;;  %s4702_s25 = smov 120   ;;  %s5555_s2 = inlined_call_operand.vmem [shape: f32[32,96], index: 2, kind: input, shape index: {}]   ;;  %s5556_s0 = inlined_call_operand.vmem [shape: f32[2,8,32], index: 0, kind: input, shape index: {}]   ;;  %s5557_s3 = inlined_call_operand.vmem [shape: f32[1,96], index: 3, kind: input, shape index: {}]   ;;  %s5558_s4 = inlined_call_operand.vmem [shape: f32[32,32], index: 4, kind: input, shape index: {}]   ;;  %s5559_s5 = inlined_call_operand.vmem [shape: f32[1,32], index: 5, kind: input, shape index: {}]   ;;  %s5560_s8 = inlined_call_operand.vmem [shape: f32[32,64], index: 8, kind: input, shape index: {}]   ;;  %s5561_s1 = inlined_call_operand.vmem [shape: f32[2,16,32], index: 1, kind: input, shape index: {}]   ;;  %s5562_s6 = inlined_call_operand.vmem [shape: f32[32,32], index: 6, kind: input, shape index: {}]   ;;  %s5563_s12 = inlined_call_operand.vmem [shape: f32[1,32], index: 12, kind: input, shape index: {}]   ;;  %s5564_s13 = inlined_call_operand.vmem [shape: f32[1,32], index: 13, kind: input, shape index: {}]   ;;  %s5565_s9 = inlined_call_operand.vmem [shape: f32[1,64], index: 9, kind: input, shape index: {}]   ;;  %s5566_s7 = inlined_call_operand.vmem [shape: f32[1,32], index: 7, kind: input, shape index: {}]   ;;  %s5567_s10 = inlined_call_operand.vmem [shape: f32[32,32], index: 10, kind: input, shape index: {}]   ;;  %s5568_s11 = inlined_call_operand.vmem [shape: f32[1,32], index: 11, kind: input, shape index: {}]   ;;  %s5569_s16 = inlined_call_operand.vmem [shape: f32[32,512], index: 16, kind: input, shape index: {}]   ;;  %s5570_s18 = inlined_call_operand.vmem [shape: f32[512,64], index: 18, kind: input, shape index: {}]   ;;  %s5571_s14 = inlined_call_operand.vmem [shape: f32[1,32], index: 14, kind: input, shape index: {}]   ;;  %s5572_s15 = inlined_call_operand.vmem [shape: f32[1,32], index: 15, kind: input, shape index: {}]   ;;  %s5573_s17 = inlined_call_operand.vmem [shape: f32[1,512], index: 17, kind: input, shape index: {}]   ;;  %s5574_s19 = inlined_call_operand.vmem [shape: f32[1,64], index: 19, kind: input, shape index: {}]   ;;  %s5575_s20 = inlined_call_operand.vmem [shape: f32[2,8,64], index: 20, kind: output, shape index: {}]  }
   0x1   :  { %5587 = sst [smem:[#allocation2_spill]] %s5555_s2  ;;  %4123 = vmatprep.subr.mxu1 %v4697_v8  ;;  %4125 = vmatprep.mubr.msk.f32.mxu1 %vm4698_vm1, %v4697_v8  ;;  %s4704_s26 = smov 112   ;;  %vm1626_vm3 = vcmask 195584   ;;  %vm1623_vm4 = vcmask 130048   ;;  %vm5090_vm5 = vmpackc.low %vm273_vm2, %vm273_vm2  ;;  %vm3835_vm6 = vcmask 523264  }
   0x2   :  { %5588 = sst [smem:[#allocation3_spill]] %s5556_s0  ;;  %s5592_s23 = sld [smem:[#allocation2_spill]] }
   0x3   :  { %5589 = sst [smem:[#allocation4_spill]] %s5557_s3  ;;  %s5593_s29 = sld [smem:[#allocation3_spill]] }
   0x4   :  { %5590 = sst [smem:[#allocation5_spill]] %s5558_s4  ;;  %s5594_s22 = sld [smem:[#allocation4_spill]] }
   0x5   :  { %5591 = sst [smem:[#allocation6_spill]] %s5559_s5  ;;  %s4701_s3 = smov 88  }
   0x6   :  { %s4703_s4 = smov 56   ;;  %s4705_s27 = smov 80  }
   0x7   :  { %s4706_s28 = smov 48   ;;  %s5583_s5 = smov 72  }
   0x8   :  { %v65_v0 = vld [vmem:[%s5592_s23] sm:$0xff]  ;;  %v66_v1 = vld [vmem:[%s5592_s23 + $0x8] sm:$0xff]  ;;  %v67_v2 = vld [vmem:[%s5592_s23 + $0x10] sm:$0xff]  ;;  %s4709_s30 = smov 40   ;;  %s5581_s2 = smov 8  }
   0x9   :  { %v4362_v3 = vpack.c.bf16 %v66_v1, %v65_v0  ;;  %v68_v4 = vld [vmem:[%s5592_s23 + $0x18] sm:$0xff]  ;;  %v4834_v5 = vld [vmem:[%s5593_s29] sm:$0xff]  ;;  %v4841_v7 = vld [vmem:[%s5593_s29 + $0x8] sm:$0xff]  ;;  %s4699_s23 = smov 96   ;;  %s4708_s29 = smov 104  }
   0xa   :  { %v4366_v6 = vpack.c.bf16 %v68_v4, %v67_v2  ;;  %4120 = vmatprep.mubr.msk.f32.mxu0 %vm188_vm0, %v4834_v5  ;;  %v3842_v9 = vld [vmem:[%s5594_s22] ss:$0 sm:$0xff]  ;;  %s5579_s21 = smov 16   ;;  %s5585_s0 = smov 24  }
   0xb   :  { %4363 = vmatprep.subr.bf16.mxu0 %v4362_v3 }
   0xc   :  { %4365 = vmatpush3.bf16.msra.mxu0 %v4362_v3 }
   0xd   :  { %4367 = vmatprep.subr.bf16.mxu0 %v4366_v6 }
  0x10   :  { %4369 = vmatpush3.bf16.msra.mxu0 %v4366_v6 }
  0x11   :  { %4143 = vmatprep.subr.mxu0 %v4697_v8 }
  0x13   :  { %4121 = vmatmul.mubr.msk.f32.vlgmr.msra.gmra.mrb[0].mxu0 %vm188_vm0, %v4841_v7 }
  0x14   :  { %4145 = vmatprep.mubr.msk.f32.mxu0 %vm4698_vm1, %v4697_v8 }
  0xe6   :  { %v4122_v10 = vpop.f32.mrb[0].mxu0 }
  0xe7   :  { %v261_v11 = vpop.f32.mrb[1].mxu0  ;;  %v4858_v13 = vadd.f32 %v4122_v10, %v3842_v9 }
  0xe8   :  { %v4854_v12 = vadd.f32 %v3842_v9, %v261_v11 }
  0xea   :  { %271 = vrot.lane.b32.xlu0 %v4854_v12, %s4699_s23 }
  0xee   :  { %349 = vrot.lane.b32.xlu0 %v4858_v13, %s4699_s23 }
 0x15c   :  { %v272_v14 = vpop.permute.xlu0 %271 }
 0x15d   :  { %4124 = vmatpush3.xpose.msk.msra.mxu1 %vm273_vm2, %v272_v14 }
 0x15e   :  { %4128 = vmatprep.subr.mxu1 %v4697_v8 }
 0x160   :  { %4126 = vmatmul.mubr.msk.f32.vlgmr.msra.gmra.mrb[0].mxu1 %vm273_vm2, %v4854_v12  ;;  %v350_v15 = vpop.permute.xlu0 %349 }
 0x161   :  { %4129 = vmatpush3.xpose.msk.msra.mxu1 %vm273_vm2, %v350_v15  ;;  %4130 = vmatprep.mubr.msk.f32.mxu1 %vm4698_vm1, %v4697_v8 }
 0x162   :  { %4133 = vmatprep.subr.mxu1 %v4697_v8 }
 0x164   :  { %4131 = vmatmul.mubr.msk.f32.vlgmr.msra.gmra.mrb[2].mxu1 %vm273_vm2, %v4858_v13 }
 0x165   :  { %4135 = vmatprep.mubr.msk.f32.mxu1 %vm4698_vm1, %v4697_v8 }
 0x233   :  { %v344_v16 = vpop.f32.mrb[0].mxu1 }
 0x234   :  { %v4127_v17 = vpop.f32.mrb[1].mxu1  ;;  %v425_v18 = vsel %vm273_vm2, %v344_v16, -inf }
 0x235   :  { %426 = vmax.xlane.f32.xlu1 %v425_v18 }
 0x237   :  { %v421_v19 = vpop.f32.mrb[2].mxu1 }
 0x238   :  { %v4132_v20 = vpop.f32.mrb[3].mxu1  ;;  %v428_v21 = vsel %vm273_vm2, %v421_v19, -inf }
 0x239   :  { %429 = vmax.xlane.f32.xlu1 %v428_v21 }
 0x24a   :  { %449 = vrot.lane.b32.xlu1 %v4854_v12, %s4700_s24 }
 0x24e   :  { %525 = vrot.lane.b32.xlu1 %v4858_v13, %s4700_s24  ;;  %s5595_s24 = sld [smem:[#allocation5_spill]] }
 0x252   :  { %603 = vrot.lane.b32.xlu1 %v4854_v12, %s4701_s3 }
 0x256   :  { %681 = vrot.lane.b32.xlu1 %v4858_v13, %s4701_s3 }
 0x2c2   :  { %v427_v22 = vpop.xlane.xlu1 %426 }
 0x2c3   :  { %v431_v23 = vsub.f32 %v344_v16, %v427_v22 }
 0x2c5   :  { %v433_v24 = vmul.f32 1.442695, %v431_v23 }
 0x2c6   :  { %v430_v25 = vpop.xlane.xlu1 %429 }
 0x2c7   :  { %4625 = vpow2.f32 %v433_v24  ;;  %v432_v26 = vsub.f32 %v421_v19, %v430_v25 }
 0x2c9   :  { %v435_v27 = vmul.f32 1.442695, %v432_v26 }
 0x2ca   :  { %v450_v28 = vpop.permute.xlu1 %449 }
 0x2cb   :  { %4627 = vpow2.f32 %v435_v27  ;;  %4134 = vmatpush3.msra.mxu1 %v450_v28 }
 0x2cc   :  { %4138 = vmatprep.subr.mxu1 %v4697_v8 }
 0x2ce   :  { %v526_v29 = vpop.permute.xlu1 %525 }
 0x2d1   :  { %v4626_v30 = vpop.eup %4625 }
 0x2d2   :  { %v604_v31 = vpop.permute.xlu1 %603  ;;  %v437_v32 = vsel %vm273_vm2, %v4626_v30, 0.0 }
 0x2d3   :  { %438 = vadd.xlane.f32.xlu0 %v437_v32  ;;  %4144 = vmatpush3.xpose.msk.msra.mxu0 %vm273_vm2, %v604_v31 }
 0x2d4   :  { %4153 = vmatprep.subr.mxu0 %v4697_v8 }
 0x2d5   :  { %v4628_v33 = vpop.eup %4627 }
 0x2d6   :  { %v440_v34 = vsel %vm273_vm2, %v4628_v33, 0.0  ;;  %v682_v35 = vpop.permute.xlu1 %681 }
 0x2d7   :  { %441 = vadd.xlane.f32.xlu1 %v440_v34 }
 0x2e8   :  { %679 = vrot.lane.b32.xlu1 %v4858_v13, %s4702_s25 }
 0x2e9   :  { %601 = vrot.lane.b32.xlu0 %v4854_v12, %s4702_s25 }
 0x360   :  { %v439_v36 = vpop.xlane.xlu0 %438 }
 0x361   :  { %4629 = vrcp.f32 %v439_v36 }
 0x364   :  { %v442_v37 = vpop.xlane.xlu1 %441  ;;  %v602_v38 = vpop.permute.xlu0 %601 }
 0x365   :  { %4631 = vrcp.f32 %v442_v37  ;;  %4146 = vmatmul.mubr.msk.f32.vlgmr.msra.gmra.mrb[2].mxu0 %vm273_vm2, %v602_v38 }
 0x366   :  { %4155 = vmatprep.mubr.msk.f32.mxu0 %vm4698_vm1, %v4697_v8 }
 0x368   :  { %v680_v43 = vpop.permute.xlu1 %679 }
 0x36b   :  { %v4630_v39 = vpop.eup %4629 }
 0x36c   :  { %v447_v40 = vmul.f32 %v4630_v39, %v4626_v30 }
 0x36e   :  { %4136 = vmatmul.mubr.msk.f32.vlgmr.msra.gmra.mrb[4].mxu1 %vm273_vm2, %v447_v40 }
 0x36f   :  { %v4632_v41 = vpop.eup %4631  ;;  %4139 = vmatpush3.msra.mxu1 %v526_v29  ;;  %4140 = vmatprep.mubr.msk.f32.mxu1 %vm4698_vm1, %v4697_v8 }
 0x370   :  { %v448_v42 = vmul.f32 %v4632_v41, %v4628_v33  ;;  %4148 = vmatprep.subr.mxu1 %v4697_v8 }
 0x372   :  { %4141 = vmatmul.mubr.msk.f32.vlgmr.msra.gmra.mrb[6].mxu1 %vm273_vm2, %v448_v42 }
 0x373   :  { %4150 = vmatprep.mubr.msk.f32.mxu1 %vm4698_vm1, %v4697_v8 }
 0x376   :  { %4149 = vmatpush3.xpose.msk.msra.mxu1 %vm273_vm2, %v682_v35 }
 0x377   :  { %4158 = vmatprep.subr.mxu1 %v4697_v8 }
 0x379   :  { %4151 = vmatmul.mubr.msk.f32.vlgmr.msra.gmra.mrb[8].mxu1 %vm273_vm2, %v680_v43 }
 0x37a   :  { %4160 = vmatprep.mubr.msk.f32.mxu1 %vm4698_vm1, %v4697_v8 }
 0x438   :  { %v675_v44 = vpop.f32.mrb[2].mxu0 }
 0x439   :  { %v4147_v45 = vpop.f32.mrb[3].mxu0  ;;  %v757_v46 = vsel %vm273_vm2, %v675_v44, -inf }
 0x43a   :  { %758 = vmax.xlane.f32.xlu1 %v757_v46 }
 0x441   :  { %v4907_v47 = vpop.f32.mrb[4].mxu1 }
 0x442   :  { %v4137_v48 = vpop.f32.mrb[5].mxu1 }
 0x445   :  { %v4909_v49 = vpop.f32.mrb[6].mxu1 }
 0x446   :  { %v4142_v50 = vpop.f32.mrb[7].mxu1 }
 0x44c   :  { %v753_v51 = vpop.f32.mrb[8].mxu1 }
 0x44d   :  { %v4152_v52 = vpop.f32.mrb[9].mxu1  ;;  %v760_v53 = vsel %vm273_vm2, %v753_v51, -inf }
 0x44e   :  { %761 = vmax.xlane.f32.xlu0 %v760_v53 }
 0x464   :  { %857 = vrot.lane.b32.xlu0 %v4858_v13, %s4703_s4 }
 0x468   :  { %933 = vrot.lane.b32.xlu0 %v4854_v12, %s4704_s26 }
 0x4c7   :  { %v759_v54 = vpop.xlane.xlu1 %758 }
 0x4c8   :  { %v763_v55 = vsub.f32 %v675_v44, %v759_v54 }
 0x4ca   :  { %v765_v56 = vmul.f32 1.442695, %v763_v55 }
 0x4cc   :  { %4633 = vpow2.f32 %v765_v56 }
 0x4d6   :  { %v4634_v57 = vpop.eup %4633 }
 0x4d7   :  { %v769_v58 = vsel %vm273_vm2, %v4634_v57, 0.0 }
 0x4d8   :  { %770 = vadd.xlane.f32.xlu1 %v769_v58 }
 0x4db   :  { %v762_v59 = vpop.xlane.xlu0 %761 }
 0x4dc   :  { %v764_v61 = vsub.f32 %v753_v51, %v762_v59 }
 0x4de   :  { %v767_v62 = vmul.f32 1.442695, %v764_v61 }
 0x4df   :  { %v858_v60 = vpop.permute.xlu0 %857 }
 0x4e0   :  { %4159 = vmatpush3.msra.mxu1 %v858_v60  ;;  %4635 = vpow2.f32 %v767_v62 }
 0x4e1   :  { %4168 = vmatprep.subr.mxu1 %v4697_v8 }
 0x4e3   :  { %v934_v9 = vpop.permute.xlu0 %933 }
 0x4e9   :  { %781 = vrot.lane.b32.xlu1 %v4854_v12, %s4703_s4 }
 0x4ea   :  { %v4636_v63 = vpop.eup %4635 }
 0x4eb   :  { %v772_v0 = vsel %vm273_vm2, %v4636_v63, 0.0 }
 0x4ed   :  { %935 = vrot.lane.b32.xlu1 %v4854_v12, %s4705_s27 }
 0x4f1   :  { %1013 = vrot.lane.b32.xlu1 %v4858_v13, %s4705_s27 }
 0x515   :  { %773 = vadd.xlane.f32.xlu1 %v772_v0 }
 0x526   :  { %1011 = vrot.lane.b32.xlu1 %v4858_v13, %s4704_s26 }
 0x565   :  { %v771_v1 = vpop.xlane.xlu1 %770 }
 0x566   :  { %4637 = vrcp.f32 %v771_v1 }
 0x569   :  { %v782_v2 = vpop.permute.xlu1 %781 }
 0x56a   :  { %4154 = vmatpush3.msra.mxu0 %v782_v2 }
 0x56b   :  { %4163 = vmatprep.subr.mxu0 %v4697_v8 }
 0x56d   :  { %v936_v6 = vpop.permute.xlu1 %935 }
 0x570   :  { %v4638_v3 = vpop.eup %4637 }
 0x571   :  { %v779_v4 = vmul.f32 %v4638_v3, %v4634_v57  ;;  %v1014_v10 = vpop.permute.xlu1 %1013 }
 0x573   :  { %4156 = vmatmul.mubr.msk.f32.vlgmr.msra.gmra.mrb[4].mxu0 %vm273_vm2, %v779_v4 }
 0x574   :  { %4164 = vmatpush3.xpose.msk.msra.mxu0 %vm273_vm2, %v936_v6  ;;  %4165 = vmatprep.mubr.msk.f32.mxu0 %vm4698_vm1, %v4697_v8 }
 0x575   :  { %4173 = vmatprep.subr.mxu0 %v4697_v8 }
 0x577   :  { %4166 = vmatmul.mubr.msk.f32.vlgmr.msra.gmra.mrb[6].mxu0 %vm273_vm2, %v934_v9 }
 0x578   :  { %4175 = vmatprep.mubr.msk.f32.mxu0 %vm4698_vm1, %v4697_v8 }
 0x5a2   :  { %v774_v11 = vpop.xlane.xlu1 %773 }
 0x5a3   :  { %4639 = vrcp.f32 %v774_v11 }
 0x5a6   :  { %v1012_v16 = vpop.permute.xlu1 %1011 }
 0x5ad   :  { %v4640_v14 = vpop.eup %4639 }
 0x5ae   :  { %v780_v15 = vmul.f32 %v4640_v14, %v4636_v63 }
 0x5b0   :  { %4161 = vmatmul.mubr.msk.f32.vlgmr.msra.gmra.mrb[10].mxu1 %vm273_vm2, %v780_v15 }
 0x5b1   :  { %4169 = vmatpush3.xpose.msk.msra.mxu1 %vm273_vm2, %v1014_v10  ;;  %4170 = vmatprep.mubr.msk.f32.mxu1 %vm4698_vm1, %v4697_v8 }
 0x5b2   :  { %4178 = vmatprep.subr.mxu1 %v4697_v8 }
 0x5b4   :  { %4171 = vmatmul.mubr.msk.f32.vlgmr.msra.gmra.mrb[12].mxu1 %vm273_vm2, %v1012_v16 }
 0x5b5   :  { %4180 = vmatprep.mubr.msk.f32.mxu1 %vm4698_vm1, %v4697_v8 }
 0x646   :  { %v4942_v17 = vpop.f32.mrb[4].mxu0 }
 0x647   :  { %v4157_v18 = vpop.f32.mrb[5].mxu0 }
 0x64a   :  { %v1007_v19 = vpop.f32.mrb[6].mxu0 }
 0x64b   :  { %v4167_v20 = vpop.f32.mrb[7].mxu0  ;;  %v1089_v21 = vsel %vm273_vm2, %v1007_v19, -inf }
 0x64c   :  { %1090 = vmax.xlane.f32.xlu0 %v1089_v21  ;;  %v72_v20 = vld [vmem:[%s5595_s24 + $0x10] sm:$0xff] }
 0x683   :  { %v4945_v22 = vpop.f32.mrb[10].mxu1 }
 0x684   :  { %v4162_v23 = vpop.f32.mrb[11].mxu1 }
 0x687   :  { %v1085_v24 = vpop.f32.mrb[12].mxu1 }
 0x688   :  { %v4172_v25 = vpop.f32.mrb[13].mxu1  ;;  %v1092_v26 = vsel %vm273_vm2, %v1085_v24, -inf }
 0x689   :  { %1093 = vmax.xlane.f32.xlu1 %v1092_v26 }
 0x69a   :  { %1113 = vrot.lane.b32.xlu1 %v4854_v12, %s4706_s28 }
 0x69e   :  { %1267 = vrot.lane.b32.xlu1 %v4854_v12, %s5583_s5 }
 0x6a2   :  { %1345 = vrot.lane.b32.xlu1 %v4858_v13, %s5583_s5 }
 0x6a6   :  { %1343 = vrot.lane.b32.xlu1 %v4858_v13, %s4708_s29 }
 0x6d9   :  { %v1091_v27 = vpop.xlane.xlu0 %1090 }
 0x6da   :  { %v1095_v28 = vsub.f32 %v1007_v19, %v1091_v27  ;;  %v71_v19 = vld [vmem:[%s5595_s24 + $0x8] sm:$0xff] }
 0x6dc   :  { %v1097_v29 = vmul.f32 1.442695, %v1095_v28 }
 0x6de   :  { %4641 = vpow2.f32 %v1097_v29 }
 0x6e8   :  { %v4642_v30 = vpop.eup %4641 }
 0x6e9   :  { %v1101_v31 = vsel %vm273_vm2, %v4642_v30, 0.0 }
 0x6ea   :  { %1102 = vadd.xlane.f32.xlu0 %v1101_v31 }
 0x700   :  { %1189 = vrot.lane.b32.xlu0 %v4858_v13, %s4706_s28  ;;  %s5602_s28 = smov 24  }
 0x716   :  { %v1094_v32 = vpop.xlane.xlu1 %1093 }
 0x717   :  { %v1096_v33 = vsub.f32 %v1085_v24, %v1094_v32 }
 0x719   :  { %v1099_v34 = vmul.f32 1.442695, %v1096_v33 }
 0x71a   :  { %v1114_v35 = vpop.permute.xlu1 %1113 }
 0x71b   :  { %4643 = vpow2.f32 %v1099_v34  ;;  %4174 = vmatpush3.msra.mxu0 %v1114_v35 }
 0x71c   :  { %4183 = vmatprep.subr.mxu0 %v4697_v8 }
 0x71e   :  { %v1268_v42 = vpop.permute.xlu1 %1267 }
 0x722   :  { %v1346_v46 = vpop.permute.xlu1 %1345 }
 0x725   :  { %v4644_v36 = vpop.eup %4643 }
 0x726   :  { %v1104_v37 = vsel %vm273_vm2, %v4644_v36, 0.0  ;;  %v1344_v50 = vpop.permute.xlu1 %1343 }
 0x727   :  { %1105 = vadd.xlane.f32.xlu0 %v1104_v37 }
 0x73d   :  { %1265 = vrot.lane.b32.xlu0 %v4854_v12, %s4708_s29 }
 0x777   :  { %v1103_v38 = vpop.xlane.xlu0 %1102 }
 0x778   :  { %4645 = vrcp.f32 %v1103_v38 }
 0x77b   :  { %v1190_v39 = vpop.permute.xlu0 %1189 }
 0x77c   :  { %4179 = vmatpush3.msra.mxu1 %v1190_v39 }
 0x77d   :  { %4188 = vmatprep.subr.mxu1 %v4697_v8 }
 0x782   :  { %v4646_v40 = vpop.eup %4645 }
 0x783   :  { %v1111_v41 = vmul.f32 %v4646_v40, %v4642_v30 }
 0x785   :  { %4176 = vmatmul.mubr.msk.f32.vlgmr.msra.gmra.mrb[8].mxu0 %vm273_vm2, %v1111_v41 }
 0x786   :  { %4184 = vmatpush3.xpose.msk.msra.mxu0 %vm273_vm2, %v1268_v42  ;;  %4185 = vmatprep.mubr.msk.f32.mxu0 %vm4698_vm1, %v4697_v8 }
 0x787   :  { %4193 = vmatprep.subr.mxu0 %v4697_v8 }
 0x7b4   :  { %v1106_v43 = vpop.xlane.xlu0 %1105 }
 0x7b5   :  { %4647 = vrcp.f32 %v1106_v43 }
 0x7b8   :  { %v1266_v44 = vpop.permute.xlu0 %1265 }
 0x7b9   :  { %4186 = vmatmul.mubr.msk.f32.vlgmr.msra.gmra.mrb[10].mxu0 %vm273_vm2, %v1266_v44 }
 0x7ba   :  { %4195 = vmatprep.mubr.msk.f32.mxu0 %vm4698_vm1, %v4697_v8 }
 0x7bf   :  { %v4648_v45 = vpop.eup %4647 }
 0x7c0   :  { %v1112_v48 = vmul.f32 %v4648_v45, %v4644_v36 }
 0x7c2   :  { %4181 = vmatmul.mubr.msk.f32.vlgmr.msra.gmra.mrb[14].mxu1 %vm273_vm2, %v1112_v48 }
 0x7c3   :  { %4189 = vmatpush3.xpose.msk.msra.mxu1 %vm273_vm2, %v1346_v46  ;;  %4190 = vmatprep.mubr.msk.f32.mxu1 %vm4698_vm1, %v4697_v8 }
 0x7c4   :  { %4198 = vmatprep.subr.mxu1 %v4697_v8 }
 0x7c6   :  { %4191 = vmatmul.mubr.msk.f32.vlgmr.msra.gmra.mrb[16].mxu1 %vm273_vm2, %v1344_v50 }
 0x7c7   :  { %4200 = vmatprep.mubr.msk.f32.mxu1 %vm4698_vm1, %v4697_v8 }
 0x858   :  { %v1185_v51 = vpop.f32.mrb[8].mxu0 }
 0x859   :  { %v4177_v52 = vpop.f32.mrb[9].mxu0 }
 0x88c   :  { %v1339_v53 = vpop.f32.mrb[10].mxu0 }
 0x88d   :  { %v4187_v54 = vpop.f32.mrb[11].mxu0  ;;  %v1421_v55 = vsel %vm273_vm2, %v1339_v53, -inf }
 0x88e   :  { %1422 = vmax.xlane.f32.xlu0 %v1421_v55 }
 0x895   :  { %v1261_v56 = vpop.f32.mrb[14].mxu1 }
 0x896   :  { %v4182_v57 = vpop.f32.mrb[15].mxu1 }
 0x899   :  { %v1417_v58 = vpop.f32.mrb[16].mxu1 }
 0x89a   :  { %v4192_v59 = vpop.f32.mrb[17].mxu1  ;;  %v1424_v60 = vsel %vm273_vm2, %v1417_v58, -inf }
 0x89b   :  { %1425 = vmax.xlane.f32.xlu1 %v1424_v60  ;;  %v82_v60 = vld [vmem:[%s5560_s8 + $0x10] sm:$0xff] }
 0x8ac   :  { %1445 = vrot.lane.b32.xlu1 %v4854_v12, %s4709_s30 }
 0x8b0   :  { %1599 = vrot.lane.b32.xlu1 %v4942_v17, %s5581_s2 }
 0x8b4   :  { %1601 = vrot.lane.b32.xlu1 %v4945_v22, %s5581_s2  ;;  %v73_v22 = vld [vmem:[%s5595_s24 + $0x18] sm:$0xff] }
 0x8b5   :  { %v4374_v23 = vpack.c.bf16 %v73_v22, %v72_v20  ;;  %v3872_v20 = vld [vmem:[%s5563_s12] ss:$0 sm:$0xff] }
 0x8b6   :  { %v3873_v22 = vld [vmem:[%s5564_s13] ss:$0 sm:$0xff] }
 0x8b8   :  { %1609 = vrot.lane.b32.xlu1 %v1261_v56, %s5579_s21 }
 0x91b   :  { %v1423_v61 = vpop.xlane.xlu0 %1422 }
 0x91c   :  { %v1427_v62 = vsub.f32 %v1339_v53, %v1423_v61  ;;  %v83_v61 = vld [vmem:[%s5560_s8 + $0x18] sm:$0xff] }
 0x91e   :  { %v1429_v63 = vmul.f32 1.442695, %v1427_v62  ;;  %v4390_v62 = vpack.c.bf16 %v83_v61, %v82_v60 }
 0x920   :  { %4649 = vpow2.f32 %v1429_v63  ;;  %v178_v63 = vld [vmem:[%s5561_s1] sm:$0xff] }
 0x928   :  { %v1426_v0 = vpop.xlane.xlu1 %1425 }
 0x929   :  { %v1428_v1 = vsub.f32 %v1417_v58, %v1426_v0  ;;  %v81_v58 = vld [vmem:[%s5560_s8 + $0x8] sm:$0xff] }
 0x92a   :  { %v4650_v2 = vpop.eup %4649  ;;  %v179_v0 = vld [vmem:[%s5561_s1 + $0x8] sm:$0xff] }
 0x92b   :  { %v1431_v3 = vmul.f32 1.442695, %v1428_v1  ;;  %v1433_v12 = vsel %vm273_vm2, %v4650_v2, 0.0  ;;  %v180_v1 = vld [vmem:[%s5561_s1 + $0x10] sm:$0xff] }
 0x92c   :  { %v1446_v4 = vpop.permute.xlu1 %1445  ;;  %1434 = vadd.xlane.f32.xlu0 %v1433_v12  ;;  %v76_v12 = vld [vmem:[%s5562_s6 + $0x8] sm:$0xff] }
 0x92d   :  { %4651 = vpow2.f32 %v1431_v3  ;;  %4194 = vmatpush3.msra.mxu0 %v1446_v4  ;;  %v75_v3 = vld [vmem:[%s5562_s6] sm:$0xff] }
 0x92e   :  { %v4378_v4 = vpack.c.bf16 %v76_v12, %v75_v3 }
 0x930   :  { %v1600_v28 = vpop.permute.xlu1 %1599 }
 0x931   :  { %v1621_v30 = vsel %vm273_vm2, %v4907_v47, %v1600_v28 }
 0x934   :  { %v1602_v34 = vpop.permute.xlu1 %1601 }
 0x935   :  { %v1622_v36 = vsel %vm273_vm2, %v4909_v49, %v1602_v34 }
 0x937   :  { %v4652_v6 = vpop.eup %4651 }
 0x938   :  { %v1436_v9 = vsel %vm273_vm2, %v4652_v6, 0.0  ;;  %v1610_v35 = vpop.permute.xlu1 %1609 }
 0x939   :  { %1437 = vadd.xlane.f32.xlu0 %v1436_v9  ;;  %v1625_v37 = vsel %vm1623_vm4, %v1622_v36, %v1610_v35  ;;  %v78_v9 = vld [vmem:[%s5562_s6 + $0x18] sm:$0xff] }
 0x94f   :  { %1521 = vrot.lane.b32.xlu0 %v4858_v13, %s4709_s30  ;;  %v70_v13 = vld [vmem:[%s5595_s24] sm:$0xff] }
 0x950   :  { %v4370_v21 = vpack.c.bf16 %v71_v19, %v70_v13 }
 0x952   :  { %4371 = vmatprep.subr.bf16.mxu0 %v4370_v21 }
 0x953   :  { %1607 = vrot.lane.b32.xlu0 %v1185_v51, %s5579_s21  ;;  %s5596_s21 = sld [smem:[#allocation6_spill]] }
 0x959   :  { %v3869_v47 = vld [vmem:[%s5596_s21] ss:$0 sm:$0xff] }
 0x9b9   :  { %v1435_v10 = vpop.xlane.xlu0 %1434 }
 0x9ba   :  { %4653 = vrcp.f32 %v1435_v10 }
 0x9c4   :  { %v4654_v11 = vpop.eup %4653 }
 0x9c5   :  { %v1443_v14 = vmul.f32 %v4654_v11, %v4650_v2  ;;  %v181_v2 = vld [vmem:[%s5561_s1 + $0x18] sm:$0xff]  ;;  %v4713_v11 = vmov 0.0|0.0  }
 0x9c6   :  { %v1438_v15 = vpop.xlane.xlu0 %1437 }
 0x9c7   :  { %4655 = vrcp.f32 %v1438_v15  ;;  %4196 = vmatmul.mubr.msk.f32.vlgmr.msra.gmra.mrb[12].mxu0 %vm273_vm2, %v1443_v14 }
 0x9c8   :  { %4373 = vmatpush3.bf16.msra.mxu0 %v4370_v21 }
 0x9c9   :  { %4375 = vmatprep.subr.bf16.mxu0 %v4374_v23 }
 0x9ca   :  { %v1522_v16 = vpop.permute.xlu0 %1521 }
 0x9cb   :  { %4199 = vmatpush3.msra.mxu1 %v1522_v16 }
 0x9cc   :  { %4377 = vmatpush3.bf16.msra.mxu0 %v4374_v23  ;;  %4379 = vmatprep.subr.bf16.mxu1 %v4378_v4 }
 0x9ce   :  { %v1608_v29 = vpop.permute.xlu0 %1607 }
 0x9cf   :  { %v1624_v31 = vsel %vm1623_vm4, %v1621_v30, %v1608_v29  ;;  %v3877_v29 = vld [vmem:[%s5565_s9] ss:$0 sm:$0xff] }
 0x9d1   :  { %v4656_v17 = vpop.eup %4655 }
 0x9d2   :  { %v1444_v18 = vmul.f32 %v4656_v17, %v4652_v6  ;;  %v77_v6 = vld [vmem:[%s5562_s6 + $0x10] sm:$0xff] }
 0x9d3   :  { %v4382_v10 = vpack.c.bf16 %v78_v9, %v77_v6 }
 0x9d4   :  { %4201 = vmatmul.mubr.msk.f32.vlgmr.msra.gmra.mrb[18].mxu1 %vm273_vm2, %v1444_v18 }
 0x9d5   :  { %4381 = vmatpush3.bf16.msra.mxu1 %v4378_v4 }
 0x9d6   :  { %4383 = vmatprep.subr.bf16.mxu1 %v4382_v10 }
 0x9d9   :  { %4385 = vmatpush3.bf16.msra.mxu1 %v4382_v10 }
 0x9da   :  { %4394 = vmatprep.subr.bf16.mxu1 %v4713_v11 }
 0xa9a   :  { %v1517_v24 = vpop.f32.mrb[12].mxu0 }
 0xa9b   :  { %1615 = vrot.lane.b32.xlu0 %v1517_v24, %s5585_s0  ;;  %v4197_v25 = vpop.f32.mrb[13].mxu0 }
 0xaa7   :  { %v1593_v26 = vpop.f32.mrb[18].mxu1 }
 0xaa8   :  { %1617 = vrot.lane.b32.xlu1 %v1593_v26, %s5585_s0  ;;  %v4202_v27 = vpop.f32.mrb[19].mxu1 }
 0xb0d   :  { %v1616_v32 = vpop.permute.xlu0 %1615 }
 0xb0e   :  { %v1627_v33 = vsel %vm1626_vm3, %v1624_v31, %v1616_v32 }
 0xb0f   :  { %4211 = vmatprep.mubr.msk.f32.mxu0 %vm188_vm0, %v1627_v33 }
 0xb1a   :  { %v1618_v38 = vpop.permute.xlu1 %1617 }
 0xb1b   :  { %v1628_v39 = vsel %vm1626_vm3, %v1625_v37, %v1618_v38 }
 0xb1c   :  { %4212 = vmatmul.mubr.msk.f32.vlgmr.msra.gmra.mrb[14].mxu0 %vm188_vm0, %v1628_v39 }
 0xb1d   :  { %4233 = vmatprep.mubr.msk.f32.mxu0 %vm188_vm0, %v178_v63 }
 0xbef   :  { %v4213_v40 = vpop.f32.mrb[14].mxu0 }
 0xbf0   :  { %v1713_v41 = vadd.f32 %v4213_v40, %v3869_v47  ;;  %v1707_v42 = vpop.f32.mrb[15].mxu0 }
 0xbf1   :  { %v1708_v43 = vadd.f32 %v3869_v47, %v1707_v42  ;;  %v3874_v42 = vld [vmem:[%s5566_s7] ss:$0 sm:$0xff]  ;;  %s5599_s7 = smov 72  }
 0xbf2   :  { %v1717_v44 = vadd.f32 %v1713_v41, %v4841_v7 }
 0xbf3   :  { %v1716_v45 = vadd.f32 %v1708_v43, %v4834_v5  ;;  %v80_v5 = vld [vmem:[%s5560_s8] sm:$0xff] }
 0xbf4   :  { %v1721_v49 = vsel %vm188_vm0, %v1717_v44, 0.0  ;;  %v4386_v59 = vpack.c.bf16 %v81_v58, %v80_v5 }
 0xbf5   :  { %1722 = vadd.xlane.f32.xlu1 %v1721_v49  ;;  %v1718_v46 = vsel %vm188_vm0, %v1716_v45, 0.0 }
 0xbf6   :  { %1719 = vadd.xlane.f32.xlu0 %v1718_v46  ;;  %4387 = vmatprep.subr.bf16.mxu0 %v4386_v59 }
 0xbf7   :  { %4389 = vmatpush3.bf16.msra.mxu0 %v4386_v59 }
 0xbf8   :  { %4391 = vmatprep.subr.bf16.mxu0 %v4390_v62 }
 0xbfb   :  { %4393 = vmatpush3.bf16.msra.mxu0 %v4390_v62 }
 0xbfc   :  { %4398 = vmatprep.subr.bf16.mxu0 %v4713_v11 }
 0xbfe   :  { %4234 = vmatmul.mubr.msk.f32.vlgmr.msra.gmra.mrb[16].mxu0 %vm188_vm0, %v179_v0 }
 0xbff   :  { %4236 = vmatprep.mubr.msk.f32.mxu0 %vm188_vm0, %v180_v1 }
 0xc02   :  { %4237 = vmatmul.mubr.msk.f32.gmra.mrb[18].mxu0 %vm188_vm0, %v181_v2 }
 0xc03   :  { %4250 = vmatprep.mubr.msk.f32.mxu0 %vm4698_vm1, %v4697_v8 }
 0xc82   :  { %v1723_v48 = vpop.xlane.xlu1 %1722 }
 0xc83   :  { %v1726_v50 = vmul.f32 0.03125, %v1723_v48  ;;  %v1720_v51 = vpop.xlane.xlu0 %1719 }
 0xc84   :  { %v1725_v52 = vmul.f32 0.03125, %v1720_v51 }
 0xc85   :  { %v1728_v53 = vsub.f32 %v1717_v44, %v1726_v50 }
 0xc86   :  { %v1727_v54 = vsub.f32 %v1716_v45, %v1725_v52 }
 0xc87   :  { %v1730_v57 = vmul.f32 %v1728_v53, %v1728_v53 }
 0xc88   :  { %v1729_v55 = vmul.f32 %v1727_v54, %v1727_v54 }
 0xc89   :  { %v1734_v7 = vsel %vm188_vm0, %v1730_v57, 0.0 }
 0xc8a   :  { %v1731_v56 = vsel %vm188_vm0, %v1729_v55, 0.0 }
 0xc8b   :  { %1732 = vadd.xlane.f32.xlu0 %v1731_v56 }
 0xc8f   :  { %1735 = vadd.xlane.f32.xlu0 %v1734_v7 }
 0xcd1   :  { %v4235_v30 = vpop.f32.mrb[16].mxu0 }
 0xcd2   :  { %v1938_v31 = vadd.f32 %v4235_v30, %v3877_v29  ;;  %v1932_v32 = vpop.f32.mrb[17].mxu0 }
 0xcd3   :  { %v1933_v33 = vadd.f32 %v3877_v29, %v1932_v32 }
 0xcd5   :  { %v4238_v35 = vpop.f32.mrb[18].mxu0  ;;  %v4395_v36 = vpack.c.bf16 %v1938_v31, %v1933_v33  ;;  %v5097_v40 = vpack.i.bf16 %v1938_v31, %v1933_v33 }
 0xcd6   :  { %v1948_v37 = vadd.f32 %v4238_v35, %v3877_v29  ;;  %v1942_v38 = vpop.f32.mrb[19].mxu0 }
 0xcd7   :  { %v1943_v39 = vadd.f32 %v3877_v29, %v1942_v38 }
 0xcd9   :  { %v4399_v47 = vpack.c.bf16 %v1948_v37, %v1943_v39  ;;  %v5102_v41 = vpack.i.bf16 %v1948_v37, %v1943_v39 }
 0xcdb   :  { %4401 = vmatpush3.bf16.xpose.msk.msra.mxu0 %vm5090_vm5, %v4399_v47 }
 0xcdc   :  { %4408 = vmatprep.subr.bf16.mxu0 %v4713_v11 }
 0xd18   :  { %v1733_v14 = vpop.xlane.xlu0 %1732 }
 0xd19   :  { %v1737_v15 = vmul.f32 0.03125, %v1733_v14 }
 0xd1b   :  { %v1739_v16 = vadd.f32 1e-05, %v1737_v15 }
 0xd1c   :  { %v1736_v17 = vpop.xlane.xlu0 %1735 }
 0xd1d   :  { %4657 = vrsqrt.f32 %v1739_v16  ;;  %v1738_v18 = vmul.f32 0.03125, %v1736_v17 }
 0xd1f   :  { %v1740_v13 = vadd.f32 1e-05, %v1738_v18 }
 0xd21   :  { %4659 = vrsqrt.f32 %v1740_v13 }
 0xd27   :  { %v4658_v19 = vpop.eup %4657 }
 0xd28   :  { %v1743_v21 = vmul.f32 %v4658_v19, %v1727_v54 }
 0xd2a   :  { %v1751_v23 = vmul.f32 %v3872_v20, %v1743_v21 }
 0xd2b   :  { %v4660_v24 = vpop.eup %4659 }
 0xd2c   :  { %v1744_v25 = vmul.f32 %v4660_v24, %v1728_v53  ;;  %v5075_v26 = vadd.f32 %v3873_v22, %v1751_v23 }
 0xd2e   :  { %v1752_v27 = vmul.f32 %v3872_v20, %v1744_v25  ;;  %4222 = vmatprep.mubr.msk.f32.mxu1 %vm188_vm0, %v5075_v26 }
 0xd30   :  { %v5079_v28 = vadd.f32 %v3873_v22, %v1752_v27 }
 0xd32   :  { %4223 = vmatmul.mubr.msk.f32.vlgmr.msra.gmra.mrb[20].mxu1 %vm188_vm0, %v5079_v28 }
 0xd33   :  { %4243 = vmatprep.mubr.msk.f32.mxu1 %vm4698_vm1, %v4697_v8  ;;  %4397 = vmatpush3.bf16.xpose.msk.msra.mxu1 %vm5090_vm5, %v4395_v36 }
 0xd34   :  { %4402 = vmatprep.subr.bf16.mxu1 %v4713_v11 }
 0xe05   :  { %v4224_v43 = vpop.f32.mrb[20].mxu1 }
 0xe06   :  { %v5107_v44 = vadd.f32 %v4224_v43, %v3874_v42  ;;  %v1839_v45 = vpop.f32.mrb[21].mxu1 }
 0xe07   :  { %v5109_v49 = vadd.f32 %v3874_v42, %v1839_v45 }
 0xe08   :  { %4251 = vmatmul.mubr.msk.f32.vlgmr.msra.gmra.mrb[20].mxu0 %vm273_vm2, %v5107_v44 }
 0xe09   :  { %4244 = vmatmul.mubr.msk.f32.vlgmr.msra.gmra.mrb[22].mxu1 %vm273_vm2, %v5109_v49  ;;  %4271 = vmatprep.mubr.msk.f32.mxu0 %vm4698_vm1, %v4697_v8 }
 0xe0a   :  { %4257 = vmatprep.mubr.msk.f32.mxu1 %vm4698_vm1, %v4697_v8 }
 0xedb   :  { %v2105_v46 = vpop.f32.mrb[20].mxu0 }
 0xedc   :  { %v2026_v48 = vpop.f32.mrb[22].mxu1  ;;  %v4252_v50 = vpop.f32.mrb[21].mxu0  ;;  %v2112_v51 = vsel %vm1623_vm4, %v2105_v46, -inf }
 0xedd   :  { %2113 = vmax.xlane.f32.xlu0 %v2112_v51  ;;  %v4245_v52 = vpop.f32.mrb[23].mxu1  ;;  %v2109_v53 = vsel %vm1623_vm4, %v2026_v48, -inf }
 0xede   :  { %2110 = vmax.xlane.f32.xlu1 %v2109_v53 }
 0xeef   :  { %4556 = vrot.lane.b32.xlu1 %v5097_v40, %s4699_s23 }
 0xef3   :  { %4566 = vrot.lane.b32.xlu1 %v5097_v40, %s4702_s25 }
 0xf6a   :  { %v2114_v54 = vpop.xlane.xlu0 %2113 }
 0xf6b   :  { %v2116_v55 = vsub.f32 %v2105_v46, %v2114_v54  ;;  %v2111_v56 = vpop.xlane.xlu1 %2110 }
 0xf6c   :  { %v2115_v57 = vsub.f32 %v2026_v48, %v2111_v56 }
 0xf6d   :  { %v2119_v7 = vmul.f32 1.442695, %v2116_v55 }
 0xf6e   :  { %v2117_v5 = vmul.f32 1.442695, %v2115_v57 }
 0xf6f   :  { %4661 = vpow2.f32 %v2119_v7  ;;  %v4557_v58 = vpop.permute.xlu1 %4556 }
 0xf70   :  { %4663 = vpow2.f32 %v2117_v5  ;;  %v4559_v59 = vunpack.i.h.bf16 %v4557_v58  ;;  %v4558_v60 = vunpack.i.l.bf16 %v4557_v58 }
 0xf72   :  { %v4403_v61 = vpack.c.bf16 %v4559_v59, %v4558_v60 }
 0xf73   :  { %v4567_v62 = vpop.permute.xlu1 %4566 }
 0xf74   :  { %v4569_v63 = vunpack.i.h.bf16 %v4567_v62  ;;  %v4568_v0 = vunpack.i.l.bf16 %v4567_v62  ;;  %4404 = vmatpush3.bf16.msra.mxu1 %v4403_v61 }
 0xf75   :  { %4405 = vmatprep.subr.bf16.mxu1 %v4713_v11 }
 0xf76   :  { %v4409_v1 = vpack.c.bf16 %v4569_v63, %v4568_v0 }
 0xf78   :  { %4411 = vmatpush3.bf16.xpose.msk.msra.mxu0 %vm5090_vm5, %v4409_v1 }
 0xf79   :  { %v4662_v2 = vpop.eup %4661  ;;  %4416 = vmatprep.subr.bf16.mxu0 %v4713_v11 }
 0xf7a   :  { %v4664_v3 = vpop.eup %4663  ;;  %v2124_v12 = vsel %vm1623_vm4, %v4662_v2, 0.0 }
 0xf7b   :  { %2125 = vadd.xlane.f32.xlu0 %v2124_v12  ;;  %v2121_v4 = vsel %vm1623_vm4, %v4664_v3, 0.0 }
 0xf7c   :  { %2122 = vadd.xlane.f32.xlu1 %v2121_v4 }
 0xf8d   :  { %4571 = vrot.lane.b32.xlu1 %v5102_v41, %s4702_s25 }
 0xf91   :  { %4561 = vrot.lane.b32.xlu0 %v5102_v41, %s4699_s23  ;;  %2373 = vrot.lane.b32.xlu1 %v5107_v44, %s4702_s25  ;;  %s5600_s23 = smov 8  }
 0xf95   :  { %2291 = vrot.lane.b32.xlu0 %v5109_v49, %s4702_s25 }
0x1008   :  { %v2126_v6 = vpop.xlane.xlu0 %2125 }
0x1009   :  { %v2123_v9 = vpop.xlane.xlu1 %2122 }
0x100a   :  { %4665 = vrcp.f32 %v2123_v9 }
0x100b   :  { %4667 = vrcp.f32 %v2126_v6 }
0x100c   :  { %v4562_v10 = vpop.permute.xlu0 %4561 }
0x100d   :  { %v4564_v15 = vunpack.i.h.bf16 %v4562_v10  ;;  %v4563_v16 = vunpack.i.l.bf16 %v4562_v10  ;;  %v4572_v20 = vpop.permute.xlu1 %4571 }
0x100e   :  { %v4574_v22 = vunpack.i.h.bf16 %v4572_v20  ;;  %v4573_v23 = vunpack.i.l.bf16 %v4572_v20 }
0x100f   :  { %v4406_v19 = vpack.c.bf16 %v4564_v15, %v4563_v16 }
0x1010   :  { %v2292_v14 = vpop.permute.xlu0 %2291  ;;  %v4413_v24 = vpack.c.bf16 %v4574_v22, %v4573_v23 }
0x1011   :  { %4272 = vmatmul.mubr.msk.f32.vlgmr.msra.gmra.mrb[22].mxu0 %vm273_vm2, %v2292_v14  ;;  %v2374_v25 = vpop.permute.xlu1 %2373 }
0x1012   :  { %4285 = vmatprep.mubr.msk.f32.mxu0 %vm4698_vm1, %v4697_v8 }
0x1014   :  { %v4666_v17 = vpop.eup %4665 }
0x1015   :  { %v2131_v18 = vmul.f32 %v4666_v17, %v4664_v3  ;;  %v4668_v13 = vpop.eup %4667 }
0x1016   :  { %v2132_v21 = vmul.f32 %v4668_v13, %v4662_v2 }
0x1017   :  { %4258 = vmatmul.mubr.msk.f32.vlgmr.msra.gmra.mrb[24].mxu1 %vm1623_vm4, %v2131_v18 }
0x1018   :  { %4407 = vmatpush3.bf16.msra.mxu1 %v4406_v19  ;;  %4264 = vmatprep.mubr.msk.f32.mxu1 %vm4698_vm1, %v4697_v8 }
0x1019   :  { %4412 = vmatprep.subr.bf16.mxu1 %v4713_v11 }
0x101b   :  { %4265 = vmatmul.mubr.msk.f32.vlgmr.msra.gmra.mrb[26].mxu1 %vm1623_vm4, %v2132_v21 }
0x101c   :  { %4278 = vmatprep.mubr.msk.f32.mxu1 %vm4698_vm1, %v4697_v8 }
0x1021   :  { %4415 = vmatpush3.bf16.xpose.msk.msra.mxu1 %vm5090_vm5, %v4413_v24 }
0x1022   :  { %4419 = vmatprep.subr.bf16.mxu1 %v4713_v11 }
0x1028   :  { %4279 = vmatmul.mubr.msk.f32.vlgmr.msra.gmra.mrb[28].mxu1 %vm273_vm2, %v2374_v25 }
0x1029   :  { %4292 = vmatprep.mubr.msk.f32.mxu1 %vm4698_vm1, %v4697_v8 }
0x10e4   :  { %v2369_v27 = vpop.f32.mrb[22].mxu0 }
0x10e5   :  { %v4273_v29 = vpop.f32.mrb[23].mxu0  ;;  %v2455_v30 = vsel %vm1623_vm4, %v2369_v27, -inf }
0x10e6   :  { %2456 = vmax.xlane.f32.xlu0 %v2455_v30 }
0x10ea   :  { %v5156_v31 = vpop.f32.mrb[24].mxu1 }
0x10eb   :  { %v4259_v32 = vpop.f32.mrb[25].mxu1 }
0x10ee   :  { %v5158_v33 = vpop.f32.mrb[26].mxu1 }
0x10ef   :  { %v4266_v35 = vpop.f32.mrb[27].mxu1 }
0x10fb   :  { %v2451_v36 = vpop.f32.mrb[28].mxu1 }
0x10fc   :  { %v4280_v37 = vpop.f32.mrb[29].mxu1  ;;  %v2458_v38 = vsel %vm1623_vm4, %v2451_v36, -inf }
0x10fd   :  { %2459 = vmax.xlane.f32.xlu1 %v2458_v38 }
0x110e   :  { %4576 = vrot.lane.b32.xlu1 %v5097_v40, %s4701_s3 }
0x1112   :  { %4586 = vrot.lane.b32.xlu1 %v5097_v40, %s4704_s26 }
0x1116   :  { %4591 = vrot.lane.b32.xlu1 %v5102_v41, %s4704_s26 }
0x111a   :  { %2719 = vrot.lane.b32.xlu1 %v5107_v44, %s4704_s26 }
0x1173   :  { %v2457_v39 = vpop.xlane.xlu0 %2456 }
0x1174   :  { %v2461_v47 = vsub.f32 %v2369_v27, %v2457_v39 }
0x1176   :  { %v2463_v42 = vmul.f32 1.442695, %v2461_v47 }
0x1178   :  { %4669 = vpow2.f32 %v2463_v42 }
0x1182   :  { %v4670_v43 = vpop.eup %4669 }
0x1183   :  { %v2467_v45 = vsel %vm1623_vm4, %v4670_v43, 0.0 }
0x1184   :  { %2468 = vadd.xlane.f32.xlu0 %v2467_v45 }
0x118a   :  { %v2460_v46 = vpop.xlane.xlu1 %2459 }
0x118b   :  { %v2462_v48 = vsub.f32 %v2451_v36, %v2460_v46 }
0x118d   :  { %v2465_v50 = vmul.f32 1.442695, %v2462_v48 }
0x118e   :  { %v4577_v51 = vpop.permute.xlu1 %4576 }
0x118f   :  { %4671 = vpow2.f32 %v2465_v50  ;;  %v4579_v52 = vunpack.i.h.bf16 %v4577_v51  ;;  %v4578_v53 = vunpack.i.l.bf16 %v4577_v51 }
0x1191   :  { %v4417_v54 = vpack.c.bf16 %v4579_v52, %v4578_v53 }
0x1192   :  { %v4587_v7 = vpop.permute.xlu1 %4586 }
0x1193   :  { %4418 = vmatpush3.bf16.msra.mxu0 %v4417_v54  ;;  %v4589_v5 = vunpack.i.h.bf16 %v4587_v7  ;;  %v4588_v58 = vunpack.i.l.bf16 %v4587_v7 }
0x1194   :  { %4422 = vmatprep.subr.bf16.mxu0 %v4713_v11 }
0x1195   :  { %v4423_v61 = vpack.c.bf16 %v4589_v5, %v4588_v58 }
0x1196   :  { %v4592_v12 = vpop.permute.xlu1 %4591 }
0x1197   :  { %v4594_v6 = vunpack.i.h.bf16 %v4592_v12  ;;  %v4593_v9 = vunpack.i.l.bf16 %v4592_v12 }
0x1199   :  { %v4672_v55 = vpop.eup %4671  ;;  %v4427_v14 = vpack.c.bf16 %v4594_v6, %v4593_v9 }
0x119a   :  { %v2470_v56 = vsel %vm1623_vm4, %v4672_v55, 0.0  ;;  %v2720_v15 = vpop.permute.xlu1 %2719 }
0x119b   :  { %2471 = vadd.xlane.f32.xlu0 %v2470_v56 }
0x11b1   :  { %4581 = vrot.lane.b32.xlu0 %v5102_v41, %s4701_s3  ;;  %s5601_s3 = smov 16  }
0x11b5   :  { %2637 = vrot.lane.b32.xlu0 %v5109_v49, %s4704_s26 }
0x1211   :  { %v2469_v57 = vpop.xlane.xlu0 %2468 }
0x1212   :  { %4673 = vrcp.f32 %v2469_v57 }
0x121c   :  { %v4674_v59 = vpop.eup %4673 }
0x121d   :  { %v2477_v60 = vmul.f32 %v4674_v59, %v4670_v43 }
0x121f   :  { %4286 = vmatmul.mubr.msk.f32.vlgmr.msra.gmra.mrb[24].mxu0 %vm1623_vm4, %v2477_v60 }
0x1220   :  { %4425 = vmatpush3.bf16.xpose.msk.msra.mxu0 %vm5090_vm5, %v4423_v61  ;;  %4299 = vmatprep.mubr.msk.f32.mxu0 %vm4698_vm1, %v4697_v8 }
0x1221   :  { %4430 = vmatprep.subr.bf16.mxu0 %v4713_v11 }
0x1228   :  { %v2472_v62 = vpop.xlane.xlu0 %2471 }
0x1229   :  { %4675 = vrcp.f32 %v2472_v62 }
0x122c   :  { %v4582_v63 = vpop.permute.xlu0 %4581 }
0x122d   :  { %v4584_v0 = vunpack.i.h.bf16 %v4582_v63  ;;  %v4583_v1 = vunpack.i.l.bf16 %v4582_v63 }
0x122f   :  { %v4420_v2 = vpack.c.bf16 %v4584_v0, %v4583_v1 }
0x1230   :  { %v2638_v3 = vpop.permute.xlu0 %2637 }
0x1231   :  { %4421 = vmatpush3.bf16.msra.mxu1 %v4420_v2  ;;  %4300 = vmatmul.mubr.msk.f32.vlgmr.msra.gmra.mrb[26].mxu0 %vm273_vm2, %v2638_v3 }
0x1232   :  { %4426 = vmatprep.subr.bf16.mxu1 %v4713_v11  ;;  %4313 = vmatprep.mubr.msk.f32.mxu0 %vm4698_vm1, %v4697_v8 }
0x1233   :  { %v4676_v4 = vpop.eup %4675 }
0x1234   :  { %v2478_v10 = vmul.f32 %v4676_v4, %v4672_v55 }
0x1236   :  { %4293 = vmatmul.mubr.msk.f32.vlgmr.msra.gmra.mrb[30].mxu1 %vm1623_vm4, %v2478_v10 }
0x1237   :  { %4306 = vmatprep.mubr.msk.f32.mxu1 %vm4698_vm1, %v4697_v8 }
0x123a   :  { %4429 = vmatpush3.bf16.xpose.msk.msra.mxu1 %vm5090_vm5, %v4427_v14 }
0x123b   :  { %4433 = vmatprep.subr.bf16.mxu1 %v4713_v11 }
0x1241   :  { %4307 = vmatmul.mubr.msk.f32.vlgmr.msra.gmra.mrb[32].mxu1 %vm273_vm2, %v2720_v15 }
0x1242   :  { %4320 = vmatprep.mubr.msk.f32.mxu1 %vm4698_vm1, %v4697_v8 }
0x12f2   :  { %v5195_v16 = vpop.f32.mrb[24].mxu0 }
0x12f3   :  { %v4287_v17 = vpop.f32.mrb[25].mxu0 }
0x1304   :  { %v2715_v18 = vpop.f32.mrb[26].mxu0 }
0x1305   :  { %v4301_v13 = vpop.f32.mrb[27].mxu0  ;;  %v2801_v19 = vsel %vm1623_vm4, %v2715_v18, -inf }
0x1306   :  { %2802 = vmax.xlane.f32.xlu0 %v2801_v19 }
0x1309   :  { %v5198_v20 = vpop.f32.mrb[30].mxu1 }
0x130a   :  { %v4294_v21 = vpop.f32.mrb[31].mxu1 }
0x1314   :  { %v2797_v22 = vpop.f32.mrb[32].mxu1 }
0x1315   :  { %v4308_v23 = vpop.f32.mrb[33].mxu1  ;;  %v2804_v24 = vsel %vm1623_vm4, %v2797_v22, -inf }
0x1316   :  { %2805 = vmax.xlane.f32.xlu1 %v2804_v24 }
0x1327   :  { %4596 = vrot.lane.b32.xlu1 %v5097_v40, %s4705_s27 }
0x132b   :  { %4606 = vrot.lane.b32.xlu1 %v5097_v40, %s4708_s29 }
0x132f   :  { %4611 = vrot.lane.b32.xlu1 %v5102_v41, %s4708_s29 }
0x1333   :  { %3065 = vrot.lane.b32.xlu1 %v5107_v44, %s4708_s29 }
0x1393   :  { %v2803_v25 = vpop.xlane.xlu0 %2802 }
0x1394   :  { %v2807_v27 = vsub.f32 %v2715_v18, %v2803_v25 }
0x1396   :  { %v2809_v29 = vmul.f32 1.442695, %v2807_v27 }
0x1398   :  { %4677 = vpow2.f32 %v2809_v29 }
0x13a2   :  { %v4678_v30 = vpop.eup %4677 }
0x13a3   :  { %v2806_v32 = vpop.xlane.xlu1 %2805  ;;  %v2813_v35 = vsel %vm1623_vm4, %v4678_v30, 0.0 }
0x13a4   :  { %v2808_v36 = vsub.f32 %v2797_v22, %v2806_v32  ;;  %2814 = vadd.xlane.f32.xlu0 %v2813_v35 }
0x13a6   :  { %v2811_v37 = vmul.f32 1.442695, %v2808_v36 }
0x13a7   :  { %v4597_v38 = vpop.permute.xlu1 %4596 }
0x13a8   :  { %4679 = vpow2.f32 %v2811_v37  ;;  %v4599_v39 = vunpack.i.h.bf16 %v4597_v38  ;;  %v4598_v47 = vunpack.i.l.bf16 %v4597_v38 }
0x13aa   :  { %v4431_v42 = vpack.c.bf16 %v4599_v39, %v4598_v47  ;;  %v86_v47 = vld [vmem:[%s5567_s10 + $0x8] sm:$0xff] }
0x13ab   :  { %v4607_v46 = vpop.permute.xlu1 %4606 }
0x13ac   :  { %4432 = vmatpush3.bf16.msra.mxu0 %v4431_v42  ;;  %v4609_v48 = vunpack.i.h.bf16 %v4607_v46  ;;  %v4608_v50 = vunpack.i.l.bf16 %v4607_v46  ;;  %v87_v42 = vld [vmem:[%s5567_s10 + $0x10] sm:$0xff] }
0x13ad   :  { %4436 = vmatprep.subr.bf16.mxu0 %v4713_v11 }
0x13ae   :  { %v4437_v53 = vpack.c.bf16 %v4609_v48, %v4608_v50 }
0x13af   :  { %v4612_v5 = vpop.permute.xlu1 %4611 }
0x13b0   :  { %v4614_v59 = vunpack.i.h.bf16 %v4612_v5  ;;  %v4613_v60 = vunpack.i.l.bf16 %v4612_v5 }
0x13b2   :  { %v4680_v44 = vpop.eup %4679  ;;  %v4441_v62 = vpack.c.bf16 %v4614_v59, %v4613_v60 }
0x13b3   :  { %v2816_v43 = vsel %vm1623_vm4, %v4680_v44, 0.0  ;;  %v3066_v63 = vpop.permute.xlu1 %3065 }
0x13b4   :  { %2817 = vadd.xlane.f32.xlu0 %v2816_v43  ;;  %v88_v43 = vld [vmem:[%s5567_s10 + $0x18] sm:$0xff] }
0x13ca   :  { %4601 = vrot.lane.b32.xlu0 %v5102_v41, %s4705_s27 }
0x13ce   :  { %2983 = vrot.lane.b32.xlu0 %v5109_v49, %s4708_s29 }
0x1431   :  { %v2815_v45 = vpop.xlane.xlu0 %2814 }
0x1432   :  { %4681 = vrcp.f32 %v2815_v45  ;;  %v4454_v45 = vpack.c.bf16 %v88_v43, %v87_v42  ;;  %v127_v42 = vld [vmem:[%s5570_s18 + $0x80] sm:$0xff] }
0x1433   :  { %v159_v43 = vld [vmem:[%s5570_s18 + $0x180] sm:$0xff] }
0x143c   :  { %v4682_v51 = vpop.eup %4681 }
0x143d   :  { %v2823_v52 = vmul.f32 %v4682_v51, %v4678_v30 }
0x143f   :  { %4314 = vmatmul.mubr.msk.f32.vlgmr.msra.gmra.mrb[28].mxu0 %vm1623_vm4, %v2823_v52 }
0x1440   :  { %4439 = vmatpush3.bf16.xpose.msk.msra.mxu0 %vm5090_vm5, %v4437_v53  ;;  %4327 = vmatprep.mubr.msk.f32.mxu0 %vm4698_vm1, %v4697_v8 }
0x1441   :  { %v2818_v54 = vpop.xlane.xlu0 %2817  ;;  %4444 = vmatprep.subr.bf16.mxu0 %v4713_v11 }
0x1442   :  { %4683 = vrcp.f32 %v2818_v54 }
0x1445   :  { %v4602_v49 = vpop.permute.xlu0 %4601 }
0x1446   :  { %v4604_v55 = vunpack.i.h.bf16 %v4602_v49  ;;  %v4603_v56 = vunpack.i.l.bf16 %v4602_v49 }
0x1448   :  { %v4434_v57 = vpack.c.bf16 %v4604_v55, %v4603_v56 }
0x1449   :  { %v2984_v7 = vpop.permute.xlu0 %2983 }
0x144a   :  { %4435 = vmatpush3.bf16.msra.mxu1 %v4434_v57  ;;  %4328 = vmatmul.mubr.msk.f32.vlgmr.msra.gmra.mrb[30].mxu0 %vm273_vm2, %v2984_v7 }
0x144b   :  { %4440 = vmatprep.subr.bf16.mxu1 %v4713_v11  ;;  %4341 = vmatprep.mubr.msk.f32.mxu0 %vm4698_vm1, %v4697_v8 }
0x144c   :  { %v4684_v58 = vpop.eup %4683 }
0x144d   :  { %v2824_v61 = vmul.f32 %v4684_v58, %v4680_v44 }
0x144f   :  { %4321 = vmatmul.mubr.msk.f32.vlgmr.msra.gmra.mrb[34].mxu1 %vm1623_vm4, %v2824_v61 }
0x1450   :  { %4334 = vmatprep.mubr.msk.f32.mxu1 %vm4698_vm1, %v4697_v8 }
0x1453   :  { %4443 = vmatpush3.bf16.xpose.msk.msra.mxu1 %vm5090_vm5, %v4441_v62 }
0x1454   :  { %4447 = vmatprep.subr.bf16.mxu1 %v4713_v11 }
0x145a   :  { %4335 = vmatmul.mubr.msk.f32.vlgmr.msra.gmra.mrb[36].mxu1 %vm273_vm2, %v3066_v63 }
0x145b   :  { %4348 = vmatprep.mubr.msk.f32.mxu1 %vm4698_vm1, %v4697_v8 }
0x1512   :  { %v2900_v0 = vpop.f32.mrb[28].mxu0 }
0x1513   :  { %v4315_v1 = vpop.f32.mrb[29].mxu0 }
0x151d   :  { %v3061_v2 = vpop.f32.mrb[30].mxu0 }
0x151e   :  { %v4329_v3 = vpop.f32.mrb[31].mxu0  ;;  %v3147_v12 = vsel %vm1623_vm4, %v3061_v2, -inf }
0x151f   :  { %3148 = vmax.xlane.f32.xlu0 %v3147_v12 }
0x1522   :  { %v2979_v4 = vpop.f32.mrb[34].mxu1 }
0x1523   :  { %v4322_v6 = vpop.f32.mrb[35].mxu1 }
0x152d   :  { %v3143_v9 = vpop.f32.mrb[36].mxu1 }
0x152e   :  { %v4336_v34 = vpop.f32.mrb[37].mxu1  ;;  %v3150_v10 = vsel %vm1623_vm4, %v3143_v9, -inf }
0x152f   :  { %3151 = vmax.xlane.f32.xlu1 %v3150_v10 }
0x1540   :  { %4616 = vrot.lane.b32.xlu1 %v5097_v40, %s5599_s7 }
0x1544   :  { %3331 = vrot.lane.b32.xlu1 %v5195_v16, %s5600_s23 }
0x1548   :  { %3333 = vrot.lane.b32.xlu1 %v5198_v20, %s5600_s23 }
0x154c   :  { %3341 = vrot.lane.b32.xlu1 %v2979_v4, %s5601_s3 }
0x15ac   :  { %v3149_v11 = vpop.xlane.xlu0 %3148 }
0x15ad   :  { %v3153_v14 = vsub.f32 %v3061_v2, %v3149_v11 }
0x15af   :  { %v3155_v15 = vmul.f32 1.442695, %v3153_v14 }
0x15b1   :  { %4685 = vpow2.f32 %v3155_v15  ;;  %v95_v15 = vld [vmem:[%s5569_s16 + $0x8] sm:$0xff] }
0x15bb   :  { %v4686_v17 = vpop.eup %4685 }
0x15bc   :  { %v3152_v18 = vpop.xlane.xlu1 %3151  ;;  %v3159_v13 = vsel %vm1623_vm4, %v4686_v17, 0.0 }
0x15bd   :  { %v3154_v19 = vsub.f32 %v3143_v9, %v3152_v18  ;;  %3160 = vadd.xlane.f32.xlu0 %v3159_v13  ;;  %v97_v18 = vld [vmem:[%s5569_s16 + $0x18] sm:$0xff] }
0x15bf   :  { %v3157_v21 = vmul.f32 1.442695, %v3154_v19  ;;  %v101_v19 = vld [vmem:[%s5569_s16 + $0x38] sm:$0xff] }
0x15c0   :  { %v4617_v40 = vpop.permute.xlu1 %4616 }
0x15c1   :  { %4687 = vpow2.f32 %v3157_v21  ;;  %v4619_v22 = vunpack.i.h.bf16 %v4617_v40  ;;  %v4618_v16 = vunpack.i.l.bf16 %v4617_v40  ;;  %v94_v21 = vld [vmem:[%s5569_s16] sm:$0xff] }
0x15c2   :  { %v98_v40 = vld [vmem:[%s5569_s16 + $0x20] sm:$0xff] }
0x15c3   :  { %v4445_v23 = vpack.c.bf16 %v4619_v22, %v4618_v16  ;;  %v4466_v22 = vpack.c.bf16 %v101_v19, %v97_v18  ;;  %v4460_v16 = vpack.c.bf16 %v98_v40, %v94_v21  ;;  %v115_v21 = vld [vmem:[%s5570_s18 + $0x20] sm:$0xff]  ;;  %v116_v40 = vld [vmem:[%s5570_s18 + $0x28] sm:$0xff] }
0x15c4   :  { %v3332_v52 = vpop.permute.xlu1 %3331 }
0x15c5   :  { %4446 = vmatpush3.bf16.msra.mxu0 %v4445_v23  ;;  %v3353_v54 = vsel %vm273_vm2, %v5156_v31, %v3332_v52  ;;  %v3914_v31 = vld [vmem:[%s5568_s11] ss:$0 sm:$0xff]  ;;  %v96_v23 = vld [vmem:[%s5569_s16 + $0x10] sm:$0xff] }
0x15c8   :  { %v3334_v57 = vpop.permute.xlu1 %3333 }
0x15c9   :  { %v3354_v5 = vsel %vm273_vm2, %v5158_v33, %v3334_v57 }
0x15cb   :  { %v4688_v20 = vpop.eup %4687 }
0x15cc   :  { %v3162_v24 = vsel %vm1623_vm4, %v4688_v20, 0.0  ;;  %v3342_v7 = vpop.permute.xlu1 %3341 }
0x15cd   :  { %3163 = vadd.xlane.f32.xlu0 %v3162_v24  ;;  %v3356_v58 = vsel %vm1623_vm4, %v3354_v5, %v3342_v7  ;;  %v3918_v7 = vld [vmem:[%s5572_s15] ss:$0 sm:$0xff] }
0x15ce   :  { %v111_v5 = vld [vmem:[%s5570_s18] sm:$0xff] }
0x15e3   :  { %4621 = vrot.lane.b32.xlu0 %v5102_v41, %s5599_s7  ;;  %v85_v41 = vld [vmem:[%s5567_s10] sm:$0xff] }
0x15e4   :  { %v4450_v44 = vpack.c.bf16 %v86_v47, %v85_v41  ;;  %v108_v41 = vld [vmem:[%s5569_s16 + $0x70] sm:$0xff] }
0x15e6   :  { %4451 = vmatprep.subr.bf16.mxu0 %v4450_v44 }
0x15e7   :  { %3339 = vrot.lane.b32.xlu0 %v2900_v0, %s5601_s3 }
0x164a   :  { %v3161_v25 = vpop.xlane.xlu0 %3160 }
0x164b   :  { %4689 = vrcp.f32 %v3161_v25  ;;  %v103_v25 = vld [vmem:[%s5569_s16 + $0x48] sm:$0xff] }
0x1655   :  { %v4690_v27 = vpop.eup %4689 }
0x1656   :  { %v3169_v29 = vmul.f32 %v4690_v27, %v4686_v17  ;;  %v99_v17 = vld [vmem:[%s5569_s16 + $0x28] sm:$0xff] }
0x1657   :  { %v4458_v13 = vpack.c.bf16 %v99_v17, %v95_v15  ;;  %v107_v27 = vld [vmem:[%s5569_s16 + $0x68] sm:$0xff]  ;;  %v163_v15 = vld [vmem:[%s5570_s18 + $0x1a0] sm:$0xff] }
0x1658   :  { %4342 = vmatmul.mubr.msk.f32.vlgmr.msra.gmra.mrb[32].mxu0 %vm1623_vm4, %v3169_v29  ;;  %v105_v29 = vld [vmem:[%s5569_s16 + $0x58] sm:$0xff]  ;;  %v164_v17 = vld [vmem:[%s5570_s18 + $0x1a8] sm:$0xff] }
0x1659   :  { %4453 = vmatpush3.bf16.msra.mxu0 %v4450_v44  ;;  %v128_v44 = vld [vmem:[%s5570_s18 + $0x88] sm:$0xff] }
0x165a   :  { %v3164_v30 = vpop.xlane.xlu0 %3163  ;;  %4455 = vmatprep.subr.bf16.mxu0 %v4454_v45 }
0x165b   :  { %4691 = vrcp.f32 %v3164_v30  ;;  %v4462_v30 = vpack.c.bf16 %v107_v27, %v103_v25  ;;  %v165_v25 = vld [vmem:[%s5570_s18 + $0x1b0] sm:$0xff]  ;;  %v166_v27 = vld [vmem:[%s5570_s18 + $0x1b8] sm:$0xff] }
0x165d   :  { %4457 = vmatpush3.bf16.msra.mxu0 %v4454_v45  ;;  %v4474_v45 = vpack.c.bf16 %v128_v44, %v127_v42  ;;  %v167_v42 = vld [vmem:[%s5570_s18 + $0x1c0] sm:$0xff]  ;;  %v168_v44 = vld [vmem:[%s5570_s18 + $0x1c8] sm:$0xff] }
0x165e   :  { %v4622_v32 = vpop.permute.xlu0 %4621  ;;  %4467 = vmatprep.subr.bf16.mxu0 %v4466_v22 }
0x165f   :  { %v4624_v35 = vunpack.i.h.bf16 %v4622_v32  ;;  %v4623_v36 = vunpack.i.l.bf16 %v4622_v32  ;;  %v109_v32 = vld [vmem:[%s5569_s16 + $0x78] sm:$0xff] }
0x1661   :  { %v4448_v37 = vpack.c.bf16 %v4624_v35, %v4623_v36  ;;  %v102_v35 = vld [vmem:[%s5569_s16 + $0x40] sm:$0xff] }
0x1662   :  { %v3340_v53 = vpop.permute.xlu0 %3339  ;;  %v106_v36 = vld [vmem:[%s5569_s16 + $0x60] sm:$0xff] }
0x1663   :  { %4449 = vmatpush3.bf16.msra.mxu1 %v4448_v37  ;;  %v3355_v49 = vsel %vm1623_vm4, %v3353_v54, %v3340_v53  ;;  %v4470_v37 = vpack.c.bf16 %v109_v32, %v105_v29  ;;  %v4484_v29 = vpack.c.bf16 %v116_v40, %v115_v21  ;;  %v117_v32 = vld [vmem:[%s5570_s18 + $0x30] sm:$0xff] }
0x1664   :  { %4459 = vmatprep.subr.bf16.mxu1 %v4458_v13  ;;  %v157_v40 = vld [vmem:[%s5570_s18 + $0x170] sm:$0xff] }
0x1665   :  { %v4692_v38 = vpop.eup %4691 }
0x1666   :  { %v3170_v39 = vmul.f32 %v4692_v38, %v4688_v20  ;;  %v100_v20 = vld [vmem:[%s5569_s16 + $0x30] sm:$0xff]  ;;  %v4464_v38 = vpack.c.bf16 %v106_v36, %v102_v35  ;;  %v118_v35 = vld [vmem:[%s5570_s18 + $0x38] sm:$0xff] }
0x1667   :  { %v4468_v24 = vpack.c.bf16 %v100_v20, %v96_v23  ;;  %v148_v23 = vld [vmem:[%s5570_s18 + $0x128] sm:$0xff]  ;;  %v133_v20 = vld [vmem:[%s5570_s18 + $0xb0] sm:$0xff] }
0x1668   :  { %4349 = vmatmul.mubr.msk.f32.vlgmr.msra.gmra.mrb[38].mxu1 %vm1623_vm4, %v3170_v39  ;;  %v104_v39 = vld [vmem:[%s5569_s16 + $0x50] sm:$0xff] }
0x1669   :  { %3581 = vmatprep.mubr.f32.mxu1 %v4697_v8  ;;  %4461 = vmatpush1.bf16.msra.mxu1 %v4460_v16  ;;  %v4472_v47 = vpack.c.bf16 %v108_v41, %v104_v39  ;;  %v4514_v16 = vpack.c.bf16 %v164_v17, %v163_v15  ;;  %v150_v39 = vld [vmem:[%s5570_s18 + $0x138] sm:$0xff]  ;;  %v135_v41 = vld [vmem:[%s5570_s18 + $0xc0] sm:$0xff] }
0x166a   :  { %4463 = vmatprep.subr.bf16.mxu1 %v4462_v30  ;;  %v174_v17 = vld [vmem:[%s5570_s18 + $0x1f8] sm:$0xff] }
0x166d   :  { %4465 = vmatpush1.bf16.msra.mxu1 %v4464_v38  ;;  %v149_v38 = vld [vmem:[%s5570_s18 + $0x130] sm:$0xff] }
0x166e   :  { %4475 = vmatprep.subr.bf16.mxu1 %v4474_v45  ;;  %v4520_v45 = vpack.c.bf16 %v150_v39, %v149_v38 }
0x172b   :  { %v3246_v46 = vpop.f32.mrb[32].mxu0 }
0x172c   :  { %3347 = vrot.lane.b32.xlu0 %v3246_v46, %s5602_s28  ;;  %v4343_v48 = vpop.f32.mrb[33].mxu0  ;;  %v160_v46 = vld [vmem:[%s5570_s18 + $0x188] sm:$0xff] }
0x172d   :  { %v4506_v48 = vpack.c.bf16 %v160_v46, %v159_v43  ;;  %v4488_v43 = vpack.c.bf16 %v118_v35, %v117_v32  ;;  %v119_v46 = vld [vmem:[%s5570_s18 + $0x40] sm:$0xff] }
0x173b   :  { %v3325_v50 = vpop.f32.mrb[38].mxu1 }
0x173c   :  { %3349 = vrot.lane.b32.xlu1 %v3325_v50, %s5602_s28  ;;  %v4350_v51 = vpop.f32.mrb[39].mxu1 }
0x179e   :  { %v3348_v55 = vpop.permute.xlu0 %3347 }
0x179f   :  { %v3357_v56 = vsel %vm1626_vm3, %v3355_v49, %v3348_v55 }
0x17a0   :  { %4359 = vmatprep.mubr.msk.f32.mxu0 %vm188_vm0, %v3357_v56  ;;  %v3917_v56 = vld [vmem:[%s5571_s14] ss:$0 sm:$0xff] }
0x17ae   :  { %v3350_v59 = vpop.permute.xlu1 %3349 }
0x17af   :  { %v3358_v60 = vsel %vm1626_vm3, %v3356_v58, %v3350_v59  ;;  %v112_v58 = vld [vmem:[%s5570_s18 + $0x8] sm:$0xff]  ;;  %v143_v59 = vld [vmem:[%s5570_s18 + $0x100] sm:$0xff] }
0x17b0   :  { %4360 = vmatmul.mubr.msk.f32.vlgmr.msra.gmra.mrb[34].mxu0 %vm188_vm0, %v3358_v60  ;;  %v144_v60 = vld [vmem:[%s5570_s18 + $0x108] sm:$0xff] }
0x17b1   :  { %3658 = vmatprep.mubr.f32.mxu0 %v4697_v8  ;;  %4469 = vmatpush1.bf16.msra.mxu0 %v4468_v24  ;;  %v134_v24 = vld [vmem:[%s5570_s18 + $0xb8] sm:$0xff] }
0x17b2   :  { %4471 = vmatprep.subr.bf16.mxu0 %v4470_v37  ;;  %v4486_v36 = vpack.c.bf16 %v134_v24, %v133_v20  ;;  %v4518_v37 = vpack.c.bf16 %v166_v27, %v165_v25  ;;  %v110_v25 = vld [vmem:[%s5573_s17] sm:$0xf] }
0x17b5   :  { %4473 = vmatpush1.bf16.msra.mxu0 %v4472_v47  ;;  %v136_v47 = vld [vmem:[%s5570_s18 + $0xc8] sm:$0xff] }
0x17b6   :  { %4507 = vmatprep.subr.bf16.mxu0 %v4506_v48  ;;  %v120_v48 = vld [vmem:[%s5570_s18 + $0x48] sm:$0xff] }
0x1883   :  { %v4361_v61 = vpop.f32.mrb[34].mxu0 }
0x1884   :  { %v3443_v62 = vadd.f32 %v4361_v61, %v3914_v31  ;;  %v3437_v63 = vpop.f32.mrb[35].mxu0 }
0x1885   :  { %v3438_v0 = vadd.f32 %v3914_v31, %v3437_v63  ;;  %v129_v31 = vld [vmem:[%s5570_s18 + $0x90] sm:$0xff] }
0x1886   :  { %v3447_v1 = vadd.f32 %v3443_v62, %v5079_v28  ;;  %v130_v62 = vld [vmem:[%s5570_s18 + $0x98] sm:$0xff]  ;;  %v161_v63 = vld [vmem:[%s5570_s18 + $0x190] sm:$0xff] }
0x1887   :  { %v3446_v33 = vadd.f32 %v3438_v0, %v5075_v26  ;;  %v162_v0 = vld [vmem:[%s5570_s18 + $0x198] sm:$0xff] }
0x1888   :  { %v3451_v2 = vsel %vm188_vm0, %v3447_v1, 0.0 }
0x1889   :  { %3452 = vadd.xlane.f32.xlu1 %v3451_v2  ;;  %v3448_v3 = vsel %vm188_vm0, %v3446_v33, 0.0 }
0x188a   :  { %3449 = vadd.xlane.f32.xlu0 %v3448_v3  ;;  %v4476_v3 = vpack.c.bf16 %v112_v58, %v111_v5  ;;  %v121_v5 = vld [vmem:[%s5570_s18 + $0x50] sm:$0xff]  ;;  %v122_v58 = vld [vmem:[%s5570_s18 + $0x58] sm:$0xff] }
0x1916   :  { %v3453_v12 = vpop.xlane.xlu1 %3452 }
0x1917   :  { %v3455_v4 = vmul.f32 0.03125, %v3453_v12  ;;  %v3450_v6 = vpop.xlane.xlu0 %3449  ;;  %v4508_v12 = vpack.c.bf16 %v144_v60, %v143_v59 }
0x1918   :  { %v3454_v9 = vmul.f32 0.03125, %v3450_v6  ;;  %v114_v6 = vld [vmem:[%s5570_s18 + $0x18] sm:$0xff] }
0x1919   :  { %v5284_v34 = vsub.f32 %v3447_v1, %v3455_v4  ;;  %v113_v4 = vld [vmem:[%s5570_s18 + $0x10] sm:$0xff] }
0x191a   :  { %v3456_v10 = vsub.f32 %v3446_v33, %v3454_v9  ;;  %v4478_v9 = vpack.c.bf16 %v130_v62, %v129_v31  ;;  %v4480_v13 = vpack.c.bf16 %v114_v6, %v113_v4  ;;  %v153_v31 = vld [vmem:[%s5570_s18 + $0x150] sm:$0xff]  ;;  %v139_v62 = vld [vmem:[%s5570_s18 + $0xe0] sm:$0xff]  ;;  %v124_v6 = vld [vmem:[%s5570_s18 + $0x68] sm:$0xff] }
0x191b   :  { %v3459_v28 = vmul.f32 %v5284_v34, %v5284_v34  ;;  %v123_v4 = vld [vmem:[%s5570_s18 + $0x60] sm:$0xff] }
0x191c   :  { %v3458_v11 = vmul.f32 %v3456_v10, %v3456_v10 }
0x191d   :  { %v3463_v26 = vsel %vm188_vm0, %v3459_v28, 0.0 }
0x191e   :  { %v3460_v14 = vsel %vm188_vm0, %v3458_v11, 0.0  ;;  %v145_v11 = vld [vmem:[%s5570_s18 + $0x110] sm:$0xff] }
0x191f   :  { %3461 = vadd.xlane.f32.xlu0 %v3460_v14  ;;  %v131_v14 = vld [vmem:[%s5570_s18 + $0xa0] sm:$0xff] }
0x1923   :  { %3464 = vadd.xlane.f32.xlu0 %v3463_v26  ;;  %v132_v26 = vld [vmem:[%s5570_s18 + $0xa8] sm:$0xff] }
0x1924   :  { %v4482_v22 = vpack.c.bf16 %v132_v26, %v131_v14  ;;  %v141_v14 = vld [vmem:[%s5570_s18 + $0xf0] sm:$0xff] }
0x1925   :  { %v173_v26 = vld [vmem:[%s5570_s18 + $0x1f0] sm:$0xff] }
0x19ac   :  { %v3462_v50 = vpop.xlane.xlu0 %3461 }
0x19ad   :  { %v3466_v51 = vmul.f32 0.03125, %v3462_v50  ;;  %v4490_v50 = vpack.c.bf16 %v136_v47, %v135_v41 }
0x19af   :  { %v3468_v52 = vadd.f32 1e-05, %v3466_v51  ;;  %v4522_v51 = vpack.c.bf16 %v168_v44, %v167_v42 }
0x19b0   :  { %v3465_v53 = vpop.xlane.xlu0 %3464 }
0x19b1   :  { %4693 = vrsqrt.f32 %v3468_v52  ;;  %v3467_v54 = vmul.f32 0.03125, %v3465_v53  ;;  %v151_v52 = vld [vmem:[%s5570_s18 + $0x140] sm:$0xff]  ;;  %v152_v53 = vld [vmem:[%s5570_s18 + $0x148] sm:$0xff] }
0x19b3   :  { %v3469_v49 = vadd.f32 1e-05, %v3467_v54  ;;  %v137_v54 = vld [vmem:[%s5570_s18 + $0xd0] sm:$0xff] }
0x19b5   :  { %4695 = vrsqrt.f32 %v3469_v49  ;;  %v138_v49 = vld [vmem:[%s5570_s18 + $0xd8] sm:$0xff] }
0x19b6   :  { %v4494_v59 = vpack.c.bf16 %v138_v49, %v137_v54 }
0x19bb   :  { %v4694_v55 = vpop.eup %4693 }
0x19bc   :  { %v3472_v57 = vmul.f32 %v4694_v55, %v3456_v10  ;;  %v4510_v10 = vpack.c.bf16 %v162_v0, %v161_v63  ;;  %v169_v55 = vld [vmem:[%s5570_s18 + $0x1d0] sm:$0xff]  ;;  %v140_v63 = vld [vmem:[%s5570_s18 + $0xe8] sm:$0xff]  ;;  %v171_v0 = vld [vmem:[%s5570_s18 + $0x1e0] sm:$0xff] }
0x19be   :  { %v3480_v61 = vmul.f32 %v3917_v56, %v3472_v57  ;;  %v4492_v57 = vpack.c.bf16 %v120_v48, %v119_v46 }
0x19bf   :  { %v4696_v1 = vpop.eup %4695 }
0x19c0   :  { %v3488_v33 = vadd.f32 %v3918_v7, %v3480_v61  ;;  %v3473_v2 = vmul.f32 %v4696_v1, %v5284_v34  ;;  %v146_v34 = vld [vmem:[%s5570_s18 + $0x118] sm:$0xff]  ;;  %v172_v1 = vld [vmem:[%s5570_s18 + $0x1e8] sm:$0xff] }
0x19c1   :  { %v4512_v19 = vpack.c.bf16 %v146_v34, %v145_v11  ;;  %v154_v61 = vld [vmem:[%s5570_s18 + $0x158] sm:$0xff]  ;;  %v156_v11 = vld [vmem:[%s5570_s18 + $0x168] sm:$0xff] }
0x19c2   :  { %3919 = vmatmul.mubr.msk.f32.vlgmr.msra.gmra.mrb[40].mxu1 %vm188_vm0, %v3488_v33  ;;  %3921 = vmatmul.mubr.msk.f32.vlgmr.msra.gmra.mrb[36].mxu0 %vm188_vm0, %v3488_v33  ;;  %v3481_v28 = vmul.f32 %v3917_v56, %v3473_v2  ;;  %v170_v56 = vld [vmem:[%s5570_s18 + $0x1d8] sm:$0xff]  ;;  %v4496_v33 = vpack.c.bf16 %v122_v58, %v121_v5  ;;  %v4528_v2 = vpack.c.bf16 %v154_v61, %v153_v31  ;;  %v3923_v61 = vld [vmem:[%s5574_s19] ss:$0 sm:$0xff] }
0x19c3   :  { %3587 = vmatprep.mubr.f32.mxu1 %v4697_v8  ;;  %3664 = vmatprep.mubr.f32.mxu0 %v4697_v8  ;;  %v147_v8 = vld [vmem:[%s5570_s18 + $0x120] sm:$0xff]  ;;  %v4526_v60 = vpack.c.bf16 %v170_v56, %v169_v55 }
0x19c4   :  { %v3489_v18 = vadd.f32 %v3918_v7, %v3481_v28  ;;  %4477 = vmatpush3.bf16.msra.mxu1 %v4476_v3  ;;  %4509 = vmatpush3.bf16.msra.mxu0 %v4508_v12  ;;  %v4516_v30 = vpack.c.bf16 %v148_v23, %v147_v8  ;;  %v4524_v7 = vpack.c.bf16 %v152_v53, %v151_v52  ;;  %v142_v28 = vld [vmem:[%s5570_s18 + $0xf8] sm:$0xff]  ;;  %v3491_v8 = vlaneseq }
0x19c5   :  { %4479 = vmatprep.subr.bf16.mxu1 %v4478_v9  ;;  %4511 = vmatprep.subr.bf16.mxu0 %v4510_v10  ;;  %v4498_v3 = vpack.c.bf16 %v140_v63, %v139_v62  ;;  %v4530_v12 = vpack.c.bf16 %v172_v1, %v171_v0  ;;  %v155_v9 = vld [vmem:[%s5570_s18 + $0x160] sm:$0xff]  ;;  %v4500_v10 = vpack.c.bf16 %v124_v6, %v123_v4 }
0x19c6   :  { %3920 = vmatmul.mubr.msk.f32.gmra.mrb[42].mxu1 %vm188_vm0, %v3489_v18  ;;  %3922 = vmatmul.mubr.msk.f32.gmra.mrb[38].mxu0 %vm188_vm0, %v3489_v18  ;;  %v4532_v34 = vpack.c.bf16 %v156_v11, %v155_v9  ;;  %v4502_v15 = vpack.c.bf16 %v142_v28, %v141_v14  ;;  %v125_v18 = vld [vmem:[%s5570_s18 + $0x70] sm:$0xff]  ;;  %v3492_v23 = vshrl.u32 %v3491_v8, 7 }
0x19c8   :  { %4481 = vmatpush3.bf16.msra.mxu1 %v4480_v13  ;;  %4513 = vmatpush3.bf16.msra.mxu0 %v4512_v19  ;;  %v126_v13 = vld [vmem:[%s5570_s18 + $0x78] sm:$0xff]  ;;  %v4534_v19 = vpack.c.bf16 %v174_v17, %v173_v26  ;;  %v3493_v20 = vsub.s32 0, %v3492_v23  ;;  %v3501_v24 = vsub.s32 2, %v3492_v23  ;;  %v3497_v27 = vsub.s32 1, %v3492_v23 }
0x19c9   :  { %4483 = vmatprep.subr.bf16.mxu1 %v4482_v22  ;;  %4515 = vmatprep.subr.bf16.mxu0 %v4514_v16  ;;  %v4504_v21 = vpack.c.bf16 %v126_v13, %v125_v18  ;;  %v158_v22 = vld [vmem:[%s5570_s18 + $0x178] sm:$0xff] }
0x19ca   :  { %v4536_v16 = vpack.c.bf16 %v158_v22, %v157_v40  ;;  %v3502_v32 = vrot.slane %v110_v25, %v3501_v24  ;;  %v3498_v35 = vrot.slane %v110_v25, %v3497_v27 }
0x19cc   :  { %4485 = vmatpush3.bf16.msra.mxu1 %v4484_v29  ;;  %4517 = vmatpush3.bf16.msra.mxu0 %v4516_v30  ;;  %v3505_v29 = vsub.s32 3, %v3492_v23  ;;  %v3494_v30 = vrot.slane %v110_v25, %v3493_v20 }
0x19cd   :  { %4487 = vmatprep.subr.bf16.mxu1 %v4486_v36  ;;  %4519 = vmatprep.subr.bf16.mxu0 %v4518_v37 }
0x19ce   :  { %v3506_v36 = vrot.slane %v110_v25, %v3505_v29 }
0x19d0   :  { %4489 = vmatpush3.bf16.msra.mxu1 %v4488_v43  ;;  %4521 = vmatpush3.bf16.msra.mxu0 %v4520_v45 }
0x19d1   :  { %4491 = vmatprep.subr.bf16.mxu1 %v4490_v50  ;;  %4523 = vmatprep.subr.bf16.mxu0 %v4522_v51 }
0x19d4   :  { %4493 = vmatpush3.bf16.msra.mxu1 %v4492_v57  ;;  %4525 = vmatpush3.bf16.msra.mxu0 %v4524_v7 }
0x19d5   :  { %4495 = vmatprep.subr.bf16.mxu1 %v4494_v59  ;;  %4527 = vmatprep.subr.bf16.mxu0 %v4526_v60 }
0x19d8   :  { %4497 = vmatpush3.bf16.msra.mxu1 %v4496_v33  ;;  %4529 = vmatpush3.bf16.msra.mxu0 %v4528_v2 }
0x19d9   :  { %4499 = vmatprep.subr.bf16.mxu1 %v4498_v3  ;;  %4531 = vmatprep.subr.bf16.mxu0 %v4530_v12 }
0x19dc   :  { %4501 = vmatpush3.bf16.msra.mxu1 %v4500_v10  ;;  %4533 = vmatpush3.bf16.msra.mxu0 %v4532_v34 }
0x19dd   :  { %4503 = vmatprep.subr.bf16.mxu1 %v4502_v15  ;;  %4535 = vmatprep.subr.bf16.mxu0 %v4534_v19 }
0x19e0   :  { %4505 = vmatpush3.bf16.msra.mxu1 %v4504_v21  ;;  %4537 = vmatpush3.bf16.msra.mxu0 %v4536_v16 }
0x1a95   :  { %v3583_v37 = vpop.f32.mrb[40].mxu1  ;;  %v3660_v38 = vpop.f32.mrb[36].mxu0 }
0x1a96   :  { %v3584_v39 = vadd.f32 %v3583_v37, %v3494_v30  ;;  %v3661_v41 = vadd.f32 %v3660_v38, %v3502_v32  ;;  %v3585_v47 = vpop.f32.mrb[41].mxu1  ;;  %v3662_v42 = vpop.f32.mrb[37].mxu0 }
0x1a97   :  { %v3586_v44 = vadd.f32 %v3585_v47, %v3498_v35  ;;  %v3663_v43 = vadd.f32 %v3662_v42, %v3506_v36 }
0x1a98   :  { %v3671_v51 = vmax.f32 %v3584_v39, 0.0  ;;  %v3673_v52 = vmax.f32 %v3661_v41, 0.0 }
0x1a99   :  { %v3672_v45 = vmax.f32 %v3586_v44, 0.0  ;;  %v3674_v46 = vmax.f32 %v3663_v43, 0.0  ;;  %v3589_v48 = vpop.f32.mrb[42].mxu1  ;;  %v3666_v50 = vpop.f32.mrb[38].mxu0 }
0x1a9a   :  { %v3590_v53 = vadd.f32 %v3589_v48, %v3494_v30  ;;  %v3667_v54 = vadd.f32 %v3666_v50, %v3502_v32  ;;  %v3591_v49 = vpop.f32.mrb[43].mxu1  ;;  %v3668_v55 = vpop.f32.mrb[39].mxu0 }
0x1a9b   :  { %v3592_v56 = vadd.f32 %v3591_v49, %v3498_v35  ;;  %v3669_v57 = vadd.f32 %v3668_v55, %v3506_v36  ;;  %3749 = vmatprep.mubr.f32.mxu1 %v3672_v45  ;;  %3824 = vmatprep.mubr.f32.mxu0 %v3674_v46 }
0x1a9c   :  { %3750 = vmatmul.mubr.f32.vlgmr.msra.gmra.mrb[44].mxu1 %v3671_v51  ;;  %3825 = vmatmul.mubr.f32.vlgmr.msra.gmra.mrb[40].mxu0 %v3673_v52  ;;  %v3675_v58 = vmax.f32 %v3590_v53, 0.0  ;;  %v3677_v59 = vmax.f32 %v3667_v54, 0.0 }
0x1a9d   :  { %v3676_v7 = vmax.f32 %v3592_v56, 0.0  ;;  %v3678_v5 = vmax.f32 %v3669_v57, 0.0 }
0x1a9f   :  { %3754 = vmatprep.mubr.f32.mxu1 %v3676_v7  ;;  %3829 = vmatprep.mubr.f32.mxu0 %v3678_v5 }
0x1aa0   :  { %3755 = vmatmul.mubr.f32.gmra.mrb[46].mxu1 %v3675_v58  ;;  %3830 = vmatmul.mubr.f32.gmra.mrb[42].mxu0 %v3677_v59 }
0x1b6f   :  { %v4068_v60 = vpop.f32.mrb[44].mxu1  ;;  %v4106_v31 = vpop.f32.mrb[40].mxu0 }
0x1b70   :  { %v4069_v62 = vpop.f32.mrb[45].mxu1  ;;  %v4107_v63 = vpop.f32.mrb[41].mxu0 }
0x1b71   :  { %v4070_v0 = vadd.f32 %v4069_v62, %v4068_v60  ;;  %v4108_v1 = vadd.f32 %v4107_v63, %v4106_v31 }
0x1b73   :  { %v3752_v33 = vadd.f32 %v4070_v0, %v3923_v61  ;;  %v4071_v2 = vpop.f32.mrb[46].mxu1  ;;  %v4109_v3 = vpop.f32.mrb[42].mxu0 }
0x1b74   :  { %v4072_v12 = vpop.f32.mrb[47].mxu1  ;;  %v4110_v4 = vpop.f32.mrb[43].mxu0 }
0x1b75   :  { %v3827_v6 = vadd.f32 %v4108_v1, %v3752_v33  ;;  %v4073_v9 = vadd.f32 %v4072_v12, %v4071_v2  ;;  %v4111_v10 = vadd.f32 %v4110_v4, %v4109_v3 }
0x1b77   :  { %3836 = vst.msk [vmem:[%s5575_s20] sm:$0xff] %vm3835_vm6, %v3827_v6  ;;  %v3757_v11 = vadd.f32 %v4073_v9, %v3923_v61 }
0x1b79   :  { %v3832_v34 = vadd.f32 %v4111_v10, %v3757_v11 }
0x1b7b   :  { %3837 = vst.msk [vmem:[%s5575_s20 + $0x8] sm:$0xff] %vm3835_vm6, %v3832_v34 }

</bundles_post_ra>
